<compile_context>
chip_gen: v6e
topology: v6e:2x2x1
jax: 0.10.0
libtpu: 0.0.40
codegen_flags: <defaults>
</compile_context>

<pallas_src>
import jax
import jax.numpy as jnp
from jax.experimental import pallas as pl
from jax.experimental.pallas import tpu as pltpu

VMEM_SPEC = pl.BlockSpec(memory_space=pltpu.MemorySpace.VMEM)


# ----------------------------------------------------------------------------
# Single fused kernel: scores -> top-k select -> GRU weight evolution -> GCN ->
# relu  (x2 layers)  -> folded linear head.
# ----------------------------------------------------------------------------
def _fused_forward_kernel(x_ref, adj_ref,
                          p1_ref, w01_ref, wr1_ref, wz1_ref, wni1_ref, wnh1_ref,
                          br1_ref, bz1_ref, bni1_ref, bnh1_ref,
                          p2_ref, w02_ref, wr2_ref, wz2_ref, wni2_ref, wnh2_ref,
                          br2_ref, bz2_ref, bni2_ref, bnh2_ref,
                          weff_ref, beff_ref, o_ref):
    adj = adj_ref[...]                                   # (N, N) pre-normalized, self-loops

    def evolve_gcnh(h_in, p_t, w0, w_r, w_z, w_ni, w_nh, b_r, b_z, b_ni, b_nh):
        n_nodes = h_in.shape[0]
        f = w0.shape[0]

        # --- TopKPooling: s = tanh(X @ (p/||p||)); pick k = F nodes, descending score,
        #     scale selected rows by their score. Fully in-kernel (unrolled masked argmax).
        s = jnp.tanh(jnp.dot(h_in, p_t, preferred_element_type=jnp.float32))      # (N, 1)
        node_pos = jax.lax.broadcasted_iota(jnp.int32, (n_nodes, 1), 0).astype(jnp.float32)
        slot_ids = jax.lax.broadcasted_iota(jnp.int32, (f, 1), 0)                 # (F, 1)
        x_tilde = jnp.zeros((f, f), jnp.float32)
        s_masked = s                                      # tanh scores in [-1,1]; -3 = masked
        for i in range(f):                                # static, fully unrolled (k = F)
            m = jnp.max(s_masked, keepdims=True)                                  # (1, 1)
            idx = jnp.min(jnp.where(s_masked == m, node_pos, float(n_nodes)),
                          keepdims=True)                                          # tie -> lowest id
            onehot = (node_pos == idx).astype(jnp.float32)                        # (N, 1)
            row = jnp.sum((onehot * s) * h_in, axis=0, keepdims=True)             # (1, F) scaled row
            x_tilde = x_tilde + (slot_ids == i).astype(jnp.float32) * row         # place at slot i
            s_masked = jnp.where(onehot > 0.5, -3.0, s_masked)

        # --- GRU weight evolution (gate-major weights; stacked contraction for r, z).
        xh = jnp.concatenate([x_tilde, w0], axis=1)                               # (F, 2F)
        r = jax.nn.sigmoid(jnp.dot(xh, w_r, preferred_element_type=jnp.float32) + b_r)
        z = jax.nn.sigmoid(jnp.dot(xh, w_z, preferred_element_type=jnp.float32) + b_z)
        ncand = jnp.tanh(
            jnp.dot(x_tilde, w_ni, preferred_element_type=jnp.float32) + b_ni
            + r * (jnp.dot(w0, w_nh, preferred_element_type=jnp.float32) + b_nh))
        w_new = (1.0 - z) * ncand + z * w0                                        # evolved GCN weight

        # --- GCNConv with fixed W on the pre-normalized adjacency, then .relu().
        hw = jnp.dot(h_in, w_new, preferred_element_type=jnp.float32)             # (N, F)
        return jnp.maximum(jnp.dot(adj, hw, preferred_element_type=jnp.float32), 0.0)

    h = evolve_gcnh(x_ref[...], p1_ref[...], w01_ref[...], wr1_ref[...], wz1_ref[...],
                    wni1_ref[...], wnh1_ref[...], br1_ref[...], bz1_ref[...],
                    bni1_ref[...], bnh1_ref[...])
    h = evolve_gcnh(h, p2_ref[...], w02_ref[...], wr2_ref[...], wz2_ref[...],
                    wni2_ref[...], wnh2_ref[...], br2_ref[...], bz2_ref[...],
                    bni2_ref[...], bnh2_ref[...])

    # TODO(synk): Dropout(0.4) is identity in eval/inference mode; training-mode masking
    #             is not implemented here.
    # Linear(F,2) -> Linear(2,1) folded to a single affine (exact).
    o_ref[...] = jnp.dot(h, weff_ref[...], preferred_element_type=jnp.float32) + beff_ref[...]


# ----------------------------------------------------------------------------
# Forward wrapper: one pallas_call for the whole model.
# ----------------------------------------------------------------------------
_LAYER_KEYS = ("p_hat_t", "w_init", "w_r", "w_z", "w_in_t", "w_hn_t",
               "b_r", "b_z", "b_in", "b_hn")


@jax.jit
def temporal_gnn_forward(x, a_norm, params):
    flat = [x, a_norm]
    for name in ("rec1", "rec2"):
        lp = params[name]
        flat += [lp[k] for k in _LAYER_KEYS]
    flat += [params["w_eff"], params["b_eff"]]
    n = x.shape[0]
    return pl.pallas_call(
        _fused_forward_kernel,
        out_shape=jax.ShapeDtypeStruct((n, 1), jnp.float32),
        in_specs=[VMEM_SPEC] * len(flat),
        out_specs=VMEM_SPEC,
    )(*flat)


# ----------------------------------------------------------------------------
# Deterministic parameter / input construction (host-side, one-time).
# ----------------------------------------------------------------------------
def _uniform(key, shape, scale):
    return jax.random.uniform(key, shape, jnp.float32, -scale, scale)


def init_evolve_layer_params(key, f):
    ks = jax.random.split(key, 6)
    std = 1.0 / float(f) ** 0.5
    p = _uniform(ks[0], (1, f), std)                      # TopKPooling attention vector
    p_hat_t = (p / jnp.maximum(jnp.linalg.norm(p), 1e-12)).T        # (F, 1), pre-normalized
    w_init = _uniform(ks[1], (f, f), std)                 # initial GCN weight (GRU hidden)
    w_ih = _uniform(ks[2], (3 * f, f), std)               # torch GRU layout, gate order r,z,n
    w_hh = _uniform(ks[3], (3 * f, f), std)
    b_ih = _uniform(ks[4], (3 * f,), std)
    b_hh = _uniform(ks[5], (3 * f,), std)
    w_ir, w_iz, w_in = w_ih[0:f], w_ih[f:2 * f], w_ih[2 * f:3 * f]
    w_hr, w_hz, w_hn = w_hh[0:f], w_hh[f:2 * f], w_hh[2 * f:3 * f]
    return dict(
        p_hat_t=p_hat_t,
        w_init=w_init,
        # gate-major, stacked for the [x_tilde ; h0] contraction:
        w_r=jnp.concatenate([w_ir.T, w_hr.T], axis=0),    # (2F, F)
        w_z=jnp.concatenate([w_iz.T, w_hz.T], axis=0),    # (2F, F)
        w_in_t=w_in.T,                                    # (F, F)
        w_hn_t=w_hn.T,                                    # (F, F)
        b_r=(b_ih[0:f] + b_hh[0:f]).reshape(1, f),        # biases pre-summed for r, z
        b_z=(b_ih[f:2 * f] + b_hh[f:2 * f]).reshape(1, f),
        b_in=b_ih[2 * f:3 * f].reshape(1, f),             # n gate needs them separate (r-gated)
        b_hn=b_hh[2 * f:3 * f].reshape(1, f),
    )


def init_params(key, dim_in):
    k1, k2, k3, k4, k5, k6 = jax.random.split(key, 6)
    std1 = 1.0 / float(dim_in) ** 0.5
    std2 = 1.0 / float(2) ** 0.5
    w1_t = _uniform(k3, (dim_in, 2), std1)                # Linear(dim_in, 2) weight^T
    b1 = _uniform(k4, (1, 2), std1)
    w2_t = _uniform(k5, (2, 1), std2)                     # Linear(2, 1) weight^T
    b2 = _uniform(k6, (1, 1), std2)
    return dict(
        rec1=init_evolve_layer_params(k1, dim_in),
        rec2=init_evolve_layer_params(k2, dim_in),
        w_eff=jnp.dot(w1_t, w2_t),                        # folded head weight  (F, 1)
        b_eff=jnp.dot(b1, w2_t) + b2,                     # folded head bias    (1, 1)
    )


def dense_normalized_adj(edge_index, edge_weight, n):
    # A[target, source] = w (message flow source -> target) + unit self-loops,
    # then symmetric normalization D^-1/2 (A+I) D^-1/2, matching PyG gcn_norm.
    a = jnp.zeros((n, n), jnp.float32)
    a = a.at[edge_index[1], edge_index[0]].add(edge_weight)
    a = a + jnp.eye(n, dtype=jnp.float32)
    deg = jnp.sum(a, axis=1)
    dinv = jnp.where(deg > 0.0, jax.lax.rsqrt(deg), 0.0)
    return dinv[:, None] * a * dinv[None, :]


if __name__ == "__main__":
    NODE_COUNT = 16   # node_count
    DIM_IN = 8        # dim_in (TopK keeps k = dim_in nodes since ratio = dim_in/node_count)

    key = jax.random.PRNGKey(0)
    kx, kew, kp = jax.random.split(key, 3)

    # Node features
    x = jax.random.normal(kx, (NODE_COUNT, DIM_IN), jnp.float32)

    # Deterministic directed edge list (ring + chords, both directions), no self-loops.
    idx = jnp.arange(NODE_COUNT)
    src = jnp.concatenate([idx, (idx + 1) % NODE_COUNT, idx, (idx + 3) % NODE_COUNT])
    tgt = jnp.concatenate([(idx + 1) % NODE_COUNT, idx, (idx + 3) % NODE_COUNT, idx])
    edge_index = jnp.stack([src, tgt]).astype(jnp.int32)            # (2, 64)
    edge_weight = jax.random.uniform(kew, (edge_index.shape[1],),
                                     jnp.float32, 0.5, 1.5)         # (64,)

    a_norm = dense_normalized_adj(edge_index, edge_weight, NODE_COUNT)
    params = init_params(kp, DIM_IN)

    out = temporal_gnn_forward(x, a_norm, params)
    out = jax.block_until_ready(out)

    assert out.shape == (NODE_COUNT, 1), out.shape
    assert bool(jnp.all(jnp.isfinite(out)))
    print("KERNEL_OK")
</pallas_src>

<mosaic_0001>
module attributes {stable_mosaic.version = 11 : i64} {
  func.func @_fused_forward_kernel(%arg0: memref<16x8xf32, #tpu.memory_space<vmem>>, %arg1: memref<16x16xf32, #tpu.memory_space<vmem>>, %arg2: memref<8x1xf32, #tpu.memory_space<vmem>>, %arg3: memref<8x8xf32, #tpu.memory_space<vmem>>, %arg4: memref<16x8xf32, #tpu.memory_space<vmem>>, %arg5: memref<16x8xf32, #tpu.memory_space<vmem>>, %arg6: memref<8x8xf32, #tpu.memory_space<vmem>>, %arg7: memref<8x8xf32, #tpu.memory_space<vmem>>, %arg8: memref<1x8xf32, #tpu.memory_space<vmem>>, %arg9: memref<1x8xf32, #tpu.memory_space<vmem>>, %arg10: memref<1x8xf32, #tpu.memory_space<vmem>>, %arg11: memref<1x8xf32, #tpu.memory_space<vmem>>, %arg12: memref<8x1xf32, #tpu.memory_space<vmem>>, %arg13: memref<8x8xf32, #tpu.memory_space<vmem>>, %arg14: memref<16x8xf32, #tpu.memory_space<vmem>>, %arg15: memref<16x8xf32, #tpu.memory_space<vmem>>, %arg16: memref<8x8xf32, #tpu.memory_space<vmem>>, %arg17: memref<8x8xf32, #tpu.memory_space<vmem>>, %arg18: memref<1x8xf32, #tpu.memory_space<vmem>>, %arg19: memref<1x8xf32, #tpu.memory_space<vmem>>, %arg20: memref<1x8xf32, #tpu.memory_space<vmem>>, %arg21: memref<1x8xf32, #tpu.memory_space<vmem>>, %arg22: memref<8x1xf32, #tpu.memory_space<vmem>>, %arg23: memref<1x1xf32, #tpu.memory_space<vmem>>, %arg24: memref<16x1xf32, #tpu.memory_space<vmem>>) attributes {dimension_semantics = [], scalar_prefetch = 0 : i64, scratch_operands = 0 : i64, tpu.core_type = #tpu.core_type<tc>} {
    %c0 = arith.constant 0 : index
    %c0_0 = arith.constant 0 : index
    %0 = vector.load %arg1[%c0, %c0_0] : memref<16x16xf32, #tpu.memory_space<vmem>>, vector<16x16xf32>
    %c0_1 = arith.constant 0 : index
    %c0_2 = arith.constant 0 : index
    %1 = vector.load %arg0[%c0_1, %c0_2] : memref<16x8xf32, #tpu.memory_space<vmem>>, vector<16x8xf32>
    %c0_3 = arith.constant 0 : index
    %c0_4 = arith.constant 0 : index
    %2 = vector.load %arg2[%c0_3, %c0_4] : memref<8x1xf32, #tpu.memory_space<vmem>>, vector<8x1xf32>
    %c0_5 = arith.constant 0 : index
    %c0_6 = arith.constant 0 : index
    %3 = vector.load %arg3[%c0_5, %c0_6] : memref<8x8xf32, #tpu.memory_space<vmem>>, vector<8x8xf32>
    %c0_7 = arith.constant 0 : index
    %c0_8 = arith.constant 0 : index
    %4 = vector.load %arg4[%c0_7, %c0_8] : memref<16x8xf32, #tpu.memory_space<vmem>>, vector<16x8xf32>
    %c0_9 = arith.constant 0 : index
    %c0_10 = arith.constant 0 : index
    %5 = vector.load %arg5[%c0_9, %c0_10] : memref<16x8xf32, #tpu.memory_space<vmem>>, vector<16x8xf32>
    %c0_11 = arith.constant 0 : index
    %c0_12 = arith.constant 0 : index
    %6 = vector.load %arg6[%c0_11, %c0_12] : memref<8x8xf32, #tpu.memory_space<vmem>>, vector<8x8xf32>
    %c0_13 = arith.constant 0 : index
    %c0_14 = arith.constant 0 : index
    %7 = vector.load %arg7[%c0_13, %c0_14] : memref<8x8xf32, #tpu.memory_space<vmem>>, vector<8x8xf32>
    %c0_15 = arith.constant 0 : index
    %c0_16 = arith.constant 0 : index
    %8 = vector.load %arg8[%c0_15, %c0_16] : memref<1x8xf32, #tpu.memory_space<vmem>>, vector<1x8xf32>
    %c0_17 = arith.constant 0 : index
    %c0_18 = arith.constant 0 : index
    %9 = vector.load %arg9[%c0_17, %c0_18] : memref<1x8xf32, #tpu.memory_space<vmem>>, vector<1x8xf32>
    %c0_19 = arith.constant 0 : index
    %c0_20 = arith.constant 0 : index
    %10 = vector.load %arg10[%c0_19, %c0_20] : memref<1x8xf32, #tpu.memory_space<vmem>>, vector<1x8xf32>
    %c0_21 = arith.constant 0 : index
    %c0_22 = arith.constant 0 : index
    %11 = vector.load %arg11[%c0_21, %c0_22] : memref<1x8xf32, #tpu.memory_space<vmem>>, vector<1x8xf32>
    %cst = arith.constant dense<0.000000e+00> : vector<16x1xf32>
    %12 = tpu.matmul %1, %2, %cst {dimension_numbers = #tpu.dot_dimension_numbers<[1], [0], [0], [1], [0, 0, 1, 1], [], []>} : vector<16x8xf32>, vector<8x1xf32>, vector<16x1xf32> -> vector<16x1xf32>
    %13 = math.tanh %12 : vector<16x1xf32>
    %14 = tpu.iota {dimensions = array<i32: 0>} : vector<16x1xi32>
    %15 = arith.sitofp %14 : vector<16x1xi32> to vector<16x1xf32>
    %16 = tpu.iota {dimensions = array<i32: 0>} : vector<8x1xi32>
    %cst_23 = arith.constant 0.000000e+00 : f32
    %17 = vector.broadcast %cst_23 : f32 to vector<8x8xf32>
    %18 = vector.shape_cast %13 : vector<16x1xf32> to vector<1x16x1xf32>
    %cst_24 = arith.constant dense<0xFF800000> : vector<1xf32>
    %19 = vector.multi_reduction <maximumf>, %18, %cst_24 [1, 2] : vector<1x16x1xf32> to vector<1xf32>
    %20 = vector.shape_cast %19 : vector<1xf32> to vector<1x1x1xf32>
    %21 = vector.extract %20[0, 0, 0] : f32 from vector<1x1x1xf32>
    %22 = vector.broadcast %21 : f32 to vector<1x1xf32>
    %23 = vector.broadcast %22 : vector<1x1xf32> to vector<16x1xf32>
    %24 = arith.cmpf oeq, %13, %23 : vector<16x1xf32>
    %cst_25 = arith.constant 1.600000e+01 : f32
    %25 = vector.broadcast %cst_25 : f32 to vector<16x1xf32>
    %26 = arith.select %24, %15, %25 : vector<16x1xi1>, vector<16x1xf32>
    %27 = vector.shape_cast %26 : vector<16x1xf32> to vector<1x16x1xf32>
    %cst_26 = arith.constant dense<0x7F800000> : vector<1xf32>
    %28 = vector.multi_reduction <minimumf>, %27, %cst_26 [1, 2] : vector<1x16x1xf32> to vector<1xf32>
    %29 = vector.shape_cast %28 : vector<1xf32> to vector<1x1x1xf32>
    %30 = vector.extract %29[0, 0, 0] : f32 from vector<1x1x1xf32>
    %31 = vector.broadcast %30 : f32 to vector<1x1xf32>
    %32 = vector.broadcast %31 : vector<1x1xf32> to vector<16x1xf32>
    %33 = arith.cmpf oeq, %15, %32 : vector<16x1xf32>
    %34 = arith.extui %33 : vector<16x1xi1> to vector<16x1xi32>
    %35 = arith.sitofp %34 : vector<16x1xi32> to vector<16x1xf32>
    %36 = arith.mulf %35, %13 : vector<16x1xf32>
    %37 = vector.broadcast %36 : vector<16x1xf32> to vector<16x8xf32>
    %38 = arith.mulf %37, %1 : vector<16x8xf32>
    %cst_27 = arith.constant dense<0.000000e+00> : vector<8xf32>
    %39 = vector.multi_reduction <add>, %38, %cst_27 [0] : vector<16x8xf32> to vector<8xf32>
    %40 = vector.shape_cast %39 : vector<8xf32> to vector<1x8xf32>
    %c0_i32 = arith.constant 0 : i32
    %41 = vector.broadcast %c0_i32 : i32 to vector<8x1xi32>
    %42 = arith.cmpi eq, %16, %41 : vector<8x1xi32>
    %43 = arith.extui %42 : vector<8x1xi1> to vector<8x1xi32>
    %44 = arith.sitofp %43 : vector<8x1xi32> to vector<8x1xf32>
    %45 = vector.broadcast %44 : vector<8x1xf32> to vector<8x8xf32>
    %46 = vector.broadcast %40 : vector<1x8xf32> to vector<8x8xf32>
    %47 = arith.mulf %45, %46 : vector<8x8xf32>
    %48 = arith.addf %17, %47 : vector<8x8xf32>
    %cst_28 = arith.constant 5.000000e-01 : f32
    %49 = vector.broadcast %cst_28 : f32 to vector<16x1xf32>
    %50 = arith.cmpf ogt, %35, %49 : vector<16x1xf32>
    %cst_29 = arith.constant -3.000000e+00 : f32
    %51 = vector.broadcast %cst_29 : f32 to vector<16x1xf32>
    %52 = arith.select %50, %51, %13 : vector<16x1xi1>, vector<16x1xf32>
    %53 = vector.shape_cast %52 : vector<16x1xf32> to vector<1x16x1xf32>
    %cst_30 = arith.constant dense<0xFF800000> : vector<1xf32>
    %54 = vector.multi_reduction <maximumf>, %53, %cst_30 [1, 2] : vector<1x16x1xf32> to vector<1xf32>
    %55 = vector.shape_cast %54 : vector<1xf32> to vector<1x1x1xf32>
    %56 = vector.extract %55[0, 0, 0] : f32 from vector<1x1x1xf32>
    %57 = vector.broadcast %56 : f32 to vector<1x1xf32>
    %58 = vector.broadcast %57 : vector<1x1xf32> to vector<16x1xf32>
    %59 = arith.cmpf oeq, %52, %58 : vector<16x1xf32>
    %cst_31 = arith.constant 1.600000e+01 : f32
    %60 = vector.broadcast %cst_31 : f32 to vector<16x1xf32>
    %61 = arith.select %59, %15, %60 : vector<16x1xi1>, vector<16x1xf32>
    %62 = vector.shape_cast %61 : vector<16x1xf32> to vector<1x16x1xf32>
    %cst_32 = arith.constant dense<0x7F800000> : vector<1xf32>
    %63 = vector.multi_reduction <minimumf>, %62, %cst_32 [1, 2] : vector<1x16x1xf32> to vector<1xf32>
    %64 = vector.shape_cast %63 : vector<1xf32> to vector<1x1x1xf32>
    %65 = vector.extract %64[0, 0, 0] : f32 from vector<1x1x1xf32>
    %66 = vector.broadcast %65 : f32 to vector<1x1xf32>
    %67 = vector.broadcast %66 : vector<1x1xf32> to vector<16x1xf32>
    %68 = arith.cmpf oeq, %15, %67 : vector<16x1xf32>
    %69 = arith.extui %68 : vector<16x1xi1> to vector<16x1xi32>
    %70 = arith.sitofp %69 : vector<16x1xi32> to vector<16x1xf32>
    %71 = arith.mulf %70, %13 : vector<16x1xf32>
    %72 = vector.broadcast %71 : vector<16x1xf32> to vector<16x8xf32>
    %73 = arith.mulf %72, %1 : vector<16x8xf32>
    %cst_33 = arith.constant dense<0.000000e+00> : vector<8xf32>
    %74 = vector.multi_reduction <add>, %73, %cst_33 [0] : vector<16x8xf32> to vector<8xf32>
    %75 = vector.shape_cast %74 : vector<8xf32> to vector<1x8xf32>
    %c1_i32 = arith.constant 1 : i32
    %76 = vector.broadcast %c1_i32 : i32 to vector<8x1xi32>
    %77 = arith.cmpi eq, %16, %76 : vector<8x1xi32>
    %78 = arith.extui %77 : vector<8x1xi1> to vector<8x1xi32>
    %79 = arith.sitofp %78 : vector<8x1xi32> to vector<8x1xf32>
    %80 = vector.broadcast %79 : vector<8x1xf32> to vector<8x8xf32>
    %81 = vector.broadcast %75 : vector<1x8xf32> to vector<8x8xf32>
    %82 = arith.mulf %80, %81 : vector<8x8xf32>
    %83 = arith.addf %48, %82 : vector<8x8xf32>
    %cst_34 = arith.constant 5.000000e-01 : f32
    %84 = vector.broadcast %cst_34 : f32 to vector<16x1xf32>
    %85 = arith.cmpf ogt, %70, %84 : vector<16x1xf32>
    %cst_35 = arith.constant -3.000000e+00 : f32
    %86 = vector.broadcast %cst_35 : f32 to vector<16x1xf32>
    %87 = arith.select %85, %86, %52 : vector<16x1xi1>, vector<16x1xf32>
    %88 = vector.shape_cast %87 : vector<16x1xf32> to vector<1x16x1xf32>
    %cst_36 = arith.constant dense<0xFF800000> : vector<1xf32>
    %89 = vector.multi_reduction <maximumf>, %88, %cst_36 [1, 2] : vector<1x16x1xf32> to vector<1xf32>
    %90 = vector.shape_cast %89 : vector<1xf32> to vector<1x1x1xf32>
    %91 = vector.extract %90[0, 0, 0] : f32 from vector<1x1x1xf32>
    %92 = vector.broadcast %91 : f32 to vector<1x1xf32>
    %93 = vector.broadcast %92 : vector<1x1xf32> to vector<16x1xf32>
    %94 = arith.cmpf oeq, %87, %93 : vector<16x1xf32>
    %cst_37 = arith.constant 1.600000e+01 : f32
    %95 = vector.broadcast %cst_37 : f32 to vector<16x1xf32>
    %96 = arith.select %94, %15, %95 : vector<16x1xi1>, vector<16x1xf32>
    %97 = vector.shape_cast %96 : vector<16x1xf32> to vector<1x16x1xf32>
    %cst_38 = arith.constant dense<0x7F800000> : vector<1xf32>
    %98 = vector.multi_reduction <minimumf>, %97, %cst_38 [1, 2] : vector<1x16x1xf32> to vector<1xf32>
    %99 = vector.shape_cast %98 : vector<1xf32> to vector<1x1x1xf32>
    %100 = vector.extract %99[0, 0, 0] : f32 from vector<1x1x1xf32>
    %101 = vector.broadcast %100 : f32 to vector<1x1xf32>
    %102 = vector.broadcast %101 : vector<1x1xf32> to vector<16x1xf32>
    %103 = arith.cmpf oeq, %15, %102 : vector<16x1xf32>
    %104 = arith.extui %103 : vector<16x1xi1> to vector<16x1xi32>
    %105 = arith.sitofp %104 : vector<16x1xi32> to vector<16x1xf32>
    %106 = arith.mulf %105, %13 : vector<16x1xf32>
    %107 = vector.broadcast %106 : vector<16x1xf32> to vector<16x8xf32>
    %108 = arith.mulf %107, %1 : vector<16x8xf32>
    %cst_39 = arith.constant dense<0.000000e+00> : vector<8xf32>
    %109 = vector.multi_reduction <add>, %108, %cst_39 [0] : vector<16x8xf32> to vector<8xf32>
    %110 = vector.shape_cast %109 : vector<8xf32> to vector<1x8xf32>
    %c2_i32 = arith.constant 2 : i32
    %111 = vector.broadcast %c2_i32 : i32 to vector<8x1xi32>
    %112 = arith.cmpi eq, %16, %111 : vector<8x1xi32>
    %113 = arith.extui %112 : vector<8x1xi1> to vector<8x1xi32>
    %114 = arith.sitofp %113 : vector<8x1xi32> to vector<8x1xf32>
    %115 = vector.broadcast %114 : vector<8x1xf32> to vector<8x8xf32>
    %116 = vector.broadcast %110 : vector<1x8xf32> to vector<8x8xf32>
    %117 = arith.mulf %115, %116 : vector<8x8xf32>
    %118 = arith.addf %83, %117 : vector<8x8xf32>
    %cst_40 = arith.constant 5.000000e-01 : f32
    %119 = vector.broadcast %cst_40 : f32 to vector<16x1xf32>
    %120 = arith.cmpf ogt, %105, %119 : vector<16x1xf32>
    %cst_41 = arith.constant -3.000000e+00 : f32
    %121 = vector.broadcast %cst_41 : f32 to vector<16x1xf32>
    %122 = arith.select %120, %121, %87 : vector<16x1xi1>, vector<16x1xf32>
    %123 = vector.shape_cast %122 : vector<16x1xf32> to vector<1x16x1xf32>
    %cst_42 = arith.constant dense<0xFF800000> : vector<1xf32>
    %124 = vector.multi_reduction <maximumf>, %123, %cst_42 [1, 2] : vector<1x16x1xf32> to vector<1xf32>
    %125 = vector.shape_cast %124 : vector<1xf32> to vector<1x1x1xf32>
    %126 = vector.extract %125[0, 0, 0] : f32 from vector<1x1x1xf32>
    %127 = vector.broadcast %126 : f32 to vector<1x1xf32>
    %128 = vector.broadcast %127 : vector<1x1xf32> to vector<16x1xf32>
    %129 = arith.cmpf oeq, %122, %128 : vector<16x1xf32>
    %cst_43 = arith.constant 1.600000e+01 : f32
    %130 = vector.broadcast %cst_43 : f32 to vector<16x1xf32>
    %131 = arith.select %129, %15, %130 : vector<16x1xi1>, vector<16x1xf32>
    %132 = vector.shape_cast %131 : vector<16x1xf32> to vector<1x16x1xf32>
    %cst_44 = arith.constant dense<0x7F800000> : vector<1xf32>
    %133 = vector.multi_reduction <minimumf>, %132, %cst_44 [1, 2] : vector<1x16x1xf32> to vector<1xf32>
    %134 = vector.shape_cast %133 : vector<1xf32> to vector<1x1x1xf32>
    %135 = vector.extract %134[0, 0, 0] : f32 from vector<1x1x1xf32>
    %136 = vector.broadcast %135 : f32 to vector<1x1xf32>
    %137 = vector.broadcast %136 : vector<1x1xf32> to vector<16x1xf32>
    %138 = arith.cmpf oeq, %15, %137 : vector<16x1xf32>
    %139 = arith.extui %138 : vector<16x1xi1> to vector<16x1xi32>
    %140 = arith.sitofp %139 : vector<16x1xi32> to vector<16x1xf32>
    %141 = arith.mulf %140, %13 : vector<16x1xf32>
    %142 = vector.broadcast %141 : vector<16x1xf32> to vector<16x8xf32>
    %143 = arith.mulf %142, %1 : vector<16x8xf32>
    %cst_45 = arith.constant dense<0.000000e+00> : vector<8xf32>
    %144 = vector.multi_reduction <add>, %143, %cst_45 [0] : vector<16x8xf32> to vector<8xf32>
    %145 = vector.shape_cast %144 : vector<8xf32> to vector<1x8xf32>
    %c3_i32 = arith.constant 3 : i32
    %146 = vector.broadcast %c3_i32 : i32 to vector<8x1xi32>
    %147 = arith.cmpi eq, %16, %146 : vector<8x1xi32>
    %148 = arith.extui %147 : vector<8x1xi1> to vector<8x1xi32>
    %149 = arith.sitofp %148 : vector<8x1xi32> to vector<8x1xf32>
    %150 = vector.broadcast %149 : vector<8x1xf32> to vector<8x8xf32>
    %151 = vector.broadcast %145 : vector<1x8xf32> to vector<8x8xf32>
    %152 = arith.mulf %150, %151 : vector<8x8xf32>
    %153 = arith.addf %118, %152 : vector<8x8xf32>
    %cst_46 = arith.constant 5.000000e-01 : f32
    %154 = vector.broadcast %cst_46 : f32 to vector<16x1xf32>
    %155 = arith.cmpf ogt, %140, %154 : vector<16x1xf32>
    %cst_47 = arith.constant -3.000000e+00 : f32
    %156 = vector.broadcast %cst_47 : f32 to vector<16x1xf32>
    %157 = arith.select %155, %156, %122 : vector<16x1xi1>, vector<16x1xf32>
    %158 = vector.shape_cast %157 : vector<16x1xf32> to vector<1x16x1xf32>
    %cst_48 = arith.constant dense<0xFF800000> : vector<1xf32>
    %159 = vector.multi_reduction <maximumf>, %158, %cst_48 [1, 2] : vector<1x16x1xf32> to vector<1xf32>
    %160 = vector.shape_cast %159 : vector<1xf32> to vector<1x1x1xf32>
    %161 = vector.extract %160[0, 0, 0] : f32 from vector<1x1x1xf32>
    %162 = vector.broadcast %161 : f32 to vector<1x1xf32>
    %163 = vector.broadcast %162 : vector<1x1xf32> to vector<16x1xf32>
    %164 = arith.cmpf oeq, %157, %163 : vector<16x1xf32>
    %cst_49 = arith.constant 1.600000e+01 : f32
    %165 = vector.broadcast %cst_49 : f32 to vector<16x1xf32>
    %166 = arith.select %164, %15, %165 : vector<16x1xi1>, vector<16x1xf32>
    %167 = vector.shape_cast %166 : vector<16x1xf32> to vector<1x16x1xf32>
    %cst_50 = arith.constant dense<0x7F800000> : vector<1xf32>
    %168 = vector.multi_reduction <minimumf>, %167, %cst_50 [1, 2] : vector<1x16x1xf32> to vector<1xf32>
    %169 = vector.shape_cast %168 : vector<1xf32> to vector<1x1x1xf32>
    %170 = vector.extract %169[0, 0, 0] : f32 from vector<1x1x1xf32>
    %171 = vector.broadcast %170 : f32 to vector<1x1xf32>
    %172 = vector.broadcast %171 : vector<1x1xf32> to vector<16x1xf32>
    %173 = arith.cmpf oeq, %15, %172 : vector<16x1xf32>
    %174 = arith.extui %173 : vector<16x1xi1> to vector<16x1xi32>
    %175 = arith.sitofp %174 : vector<16x1xi32> to vector<16x1xf32>
    %176 = arith.mulf %175, %13 : vector<16x1xf32>
    %177 = vector.broadcast %176 : vector<16x1xf32> to vector<16x8xf32>
    %178 = arith.mulf %177, %1 : vector<16x8xf32>
    %cst_51 = arith.constant dense<0.000000e+00> : vector<8xf32>
    %179 = vector.multi_reduction <add>, %178, %cst_51 [0] : vector<16x8xf32> to vector<8xf32>
    %180 = vector.shape_cast %179 : vector<8xf32> to vector<1x8xf32>
    %c4_i32 = arith.constant 4 : i32
    %181 = vector.broadcast %c4_i32 : i32 to vector<8x1xi32>
    %182 = arith.cmpi eq, %16, %181 : vector<8x1xi32>
    %183 = arith.extui %182 : vector<8x1xi1> to vector<8x1xi32>
    %184 = arith.sitofp %183 : vector<8x1xi32> to vector<8x1xf32>
    %185 = vector.broadcast %184 : vector<8x1xf32> to vector<8x8xf32>
    %186 = vector.broadcast %180 : vector<1x8xf32> to vector<8x8xf32>
    %187 = arith.mulf %185, %186 : vector<8x8xf32>
    %188 = arith.addf %153, %187 : vector<8x8xf32>
    %cst_52 = arith.constant 5.000000e-01 : f32
    %189 = vector.broadcast %cst_52 : f32 to vector<16x1xf32>
    %190 = arith.cmpf ogt, %175, %189 : vector<16x1xf32>
    %cst_53 = arith.constant -3.000000e+00 : f32
    %191 = vector.broadcast %cst_53 : f32 to vector<16x1xf32>
    %192 = arith.select %190, %191, %157 : vector<16x1xi1>, vector<16x1xf32>
    %193 = vector.shape_cast %192 : vector<16x1xf32> to vector<1x16x1xf32>
    %cst_54 = arith.constant dense<0xFF800000> : vector<1xf32>
    %194 = vector.multi_reduction <maximumf>, %193, %cst_54 [1, 2] : vector<1x16x1xf32> to vector<1xf32>
    %195 = vector.shape_cast %194 : vector<1xf32> to vector<1x1x1xf32>
    %196 = vector.extract %195[0, 0, 0] : f32 from vector<1x1x1xf32>
    %197 = vector.broadcast %196 : f32 to vector<1x1xf32>
    %198 = vector.broadcast %197 : vector<1x1xf32> to vector<16x1xf32>
    %199 = arith.cmpf oeq, %192, %198 : vector<16x1xf32>
    %cst_55 = arith.constant 1.600000e+01 : f32
    %200 = vector.broadcast %cst_55 : f32 to vector<16x1xf32>
    %201 = arith.select %199, %15, %200 : vector<16x1xi1>, vector<16x1xf32>
    %202 = vector.shape_cast %201 : vector<16x1xf32> to vector<1x16x1xf32>
    %cst_56 = arith.constant dense<0x7F800000> : vector<1xf32>
    %203 = vector.multi_reduction <minimumf>, %202, %cst_56 [1, 2] : vector<1x16x1xf32> to vector<1xf32>
    %204 = vector.shape_cast %203 : vector<1xf32> to vector<1x1x1xf32>
    %205 = vector.extract %204[0, 0, 0] : f32 from vector<1x1x1xf32>
    %206 = vector.broadcast %205 : f32 to vector<1x1xf32>
    %207 = vector.broadcast %206 : vector<1x1xf32> to vector<16x1xf32>
    %208 = arith.cmpf oeq, %15, %207 : vector<16x1xf32>
    %209 = arith.extui %208 : vector<16x1xi1> to vector<16x1xi32>
    %210 = arith.sitofp %209 : vector<16x1xi32> to vector<16x1xf32>
    %211 = arith.mulf %210, %13 : vector<16x1xf32>
    %212 = vector.broadcast %211 : vector<16x1xf32> to vector<16x8xf32>
    %213 = arith.mulf %212, %1 : vector<16x8xf32>
    %cst_57 = arith.constant dense<0.000000e+00> : vector<8xf32>
    %214 = vector.multi_reduction <add>, %213, %cst_57 [0] : vector<16x8xf32> to vector<8xf32>
    %215 = vector.shape_cast %214 : vector<8xf32> to vector<1x8xf32>
    %c5_i32 = arith.constant 5 : i32
    %216 = vector.broadcast %c5_i32 : i32 to vector<8x1xi32>
    %217 = arith.cmpi eq, %16, %216 : vector<8x1xi32>
    %218 = arith.extui %217 : vector<8x1xi1> to vector<8x1xi32>
    %219 = arith.sitofp %218 : vector<8x1xi32> to vector<8x1xf32>
    %220 = vector.broadcast %219 : vector<8x1xf32> to vector<8x8xf32>
    %221 = vector.broadcast %215 : vector<1x8xf32> to vector<8x8xf32>
    %222 = arith.mulf %220, %221 : vector<8x8xf32>
    %223 = arith.addf %188, %222 : vector<8x8xf32>
    %cst_58 = arith.constant 5.000000e-01 : f32
    %224 = vector.broadcast %cst_58 : f32 to vector<16x1xf32>
    %225 = arith.cmpf ogt, %210, %224 : vector<16x1xf32>
    %cst_59 = arith.constant -3.000000e+00 : f32
    %226 = vector.broadcast %cst_59 : f32 to vector<16x1xf32>
    %227 = arith.select %225, %226, %192 : vector<16x1xi1>, vector<16x1xf32>
    %228 = vector.shape_cast %227 : vector<16x1xf32> to vector<1x16x1xf32>
    %cst_60 = arith.constant dense<0xFF800000> : vector<1xf32>
    %229 = vector.multi_reduction <maximumf>, %228, %cst_60 [1, 2] : vector<1x16x1xf32> to vector<1xf32>
    %230 = vector.shape_cast %229 : vector<1xf32> to vector<1x1x1xf32>
    %231 = vector.extract %230[0, 0, 0] : f32 from vector<1x1x1xf32>
    %232 = vector.broadcast %231 : f32 to vector<1x1xf32>
    %233 = vector.broadcast %232 : vector<1x1xf32> to vector<16x1xf32>
    %234 = arith.cmpf oeq, %227, %233 : vector<16x1xf32>
    %cst_61 = arith.constant 1.600000e+01 : f32
    %235 = vector.broadcast %cst_61 : f32 to vector<16x1xf32>
    %236 = arith.select %234, %15, %235 : vector<16x1xi1>, vector<16x1xf32>
    %237 = vector.shape_cast %236 : vector<16x1xf32> to vector<1x16x1xf32>
    %cst_62 = arith.constant dense<0x7F800000> : vector<1xf32>
    %238 = vector.multi_reduction <minimumf>, %237, %cst_62 [1, 2] : vector<1x16x1xf32> to vector<1xf32>
    %239 = vector.shape_cast %238 : vector<1xf32> to vector<1x1x1xf32>
    %240 = vector.extract %239[0, 0, 0] : f32 from vector<1x1x1xf32>
    %241 = vector.broadcast %240 : f32 to vector<1x1xf32>
    %242 = vector.broadcast %241 : vector<1x1xf32> to vector<16x1xf32>
    %243 = arith.cmpf oeq, %15, %242 : vector<16x1xf32>
    %244 = arith.extui %243 : vector<16x1xi1> to vector<16x1xi32>
    %245 = arith.sitofp %244 : vector<16x1xi32> to vector<16x1xf32>
    %246 = arith.mulf %245, %13 : vector<16x1xf32>
    %247 = vector.broadcast %246 : vector<16x1xf32> to vector<16x8xf32>
    %248 = arith.mulf %247, %1 : vector<16x8xf32>
    %cst_63 = arith.constant dense<0.000000e+00> : vector<8xf32>
    %249 = vector.multi_reduction <add>, %248, %cst_63 [0] : vector<16x8xf32> to vector<8xf32>
    %250 = vector.shape_cast %249 : vector<8xf32> to vector<1x8xf32>
    %c6_i32 = arith.constant 6 : i32
    %251 = vector.broadcast %c6_i32 : i32 to vector<8x1xi32>
    %252 = arith.cmpi eq, %16, %251 : vector<8x1xi32>
    %253 = arith.extui %252 : vector<8x1xi1> to vector<8x1xi32>
    %254 = arith.sitofp %253 : vector<8x1xi32> to vector<8x1xf32>
    %255 = vector.broadcast %254 : vector<8x1xf32> to vector<8x8xf32>
    %256 = vector.broadcast %250 : vector<1x8xf32> to vector<8x8xf32>
    %257 = arith.mulf %255, %256 : vector<8x8xf32>
    %258 = arith.addf %223, %257 : vector<8x8xf32>
    %cst_64 = arith.constant 5.000000e-01 : f32
    %259 = vector.broadcast %cst_64 : f32 to vector<16x1xf32>
    %260 = arith.cmpf ogt, %245, %259 : vector<16x1xf32>
    %cst_65 = arith.constant -3.000000e+00 : f32
    %261 = vector.broadcast %cst_65 : f32 to vector<16x1xf32>
    %262 = arith.select %260, %261, %227 : vector<16x1xi1>, vector<16x1xf32>
    %263 = vector.shape_cast %262 : vector<16x1xf32> to vector<1x16x1xf32>
    %cst_66 = arith.constant dense<0xFF800000> : vector<1xf32>
    %264 = vector.multi_reduction <maximumf>, %263, %cst_66 [1, 2] : vector<1x16x1xf32> to vector<1xf32>
    %265 = vector.shape_cast %264 : vector<1xf32> to vector<1x1x1xf32>
    %266 = vector.extract %265[0, 0, 0] : f32 from vector<1x1x1xf32>
    %267 = vector.broadcast %266 : f32 to vector<1x1xf32>
    %268 = vector.broadcast %267 : vector<1x1xf32> to vector<16x1xf32>
    %269 = arith.cmpf oeq, %262, %268 : vector<16x1xf32>
    %cst_67 = arith.constant 1.600000e+01 : f32
    %270 = vector.broadcast %cst_67 : f32 to vector<16x1xf32>
    %271 = arith.select %269, %15, %270 : vector<16x1xi1>, vector<16x1xf32>
    %272 = vector.shape_cast %271 : vector<16x1xf32> to vector<1x16x1xf32>
    %cst_68 = arith.constant dense<0x7F800000> : vector<1xf32>
    %273 = vector.multi_reduction <minimumf>, %272, %cst_68 [1, 2] : vector<1x16x1xf32> to vector<1xf32>
    %274 = vector.shape_cast %273 : vector<1xf32> to vector<1x1x1xf32>
    %275 = vector.extract %274[0, 0, 0] : f32 from vector<1x1x1xf32>
    %276 = vector.broadcast %275 : f32 to vector<1x1xf32>
    %277 = vector.broadcast %276 : vector<1x1xf32> to vector<16x1xf32>
    %278 = arith.cmpf oeq, %15, %277 : vector<16x1xf32>
    %279 = arith.extui %278 : vector<16x1xi1> to vector<16x1xi32>
    %280 = arith.sitofp %279 : vector<16x1xi32> to vector<16x1xf32>
    %281 = arith.mulf %280, %13 : vector<16x1xf32>
    %282 = vector.broadcast %281 : vector<16x1xf32> to vector<16x8xf32>
    %283 = arith.mulf %282, %1 : vector<16x8xf32>
    %cst_69 = arith.constant dense<0.000000e+00> : vector<8xf32>
    %284 = vector.multi_reduction <add>, %283, %cst_69 [0] : vector<16x8xf32> to vector<8xf32>
    %285 = vector.shape_cast %284 : vector<8xf32> to vector<1x8xf32>
    %c7_i32 = arith.constant 7 : i32
    %286 = vector.broadcast %c7_i32 : i32 to vector<8x1xi32>
    %287 = arith.cmpi eq, %16, %286 : vector<8x1xi32>
    %288 = arith.extui %287 : vector<8x1xi1> to vector<8x1xi32>
    %289 = arith.sitofp %288 : vector<8x1xi32> to vector<8x1xf32>
    %290 = vector.broadcast %289 : vector<8x1xf32> to vector<8x8xf32>
    %291 = vector.broadcast %285 : vector<1x8xf32> to vector<8x8xf32>
    %292 = arith.mulf %290, %291 : vector<8x8xf32>
    %293 = arith.addf %258, %292 : vector<8x8xf32>
    %294 = tpu.concatenate %293, %3 in 1 : vector<8x8xf32>, vector<8x8xf32> -> vector<8x16xf32>
    %cst_70 = arith.constant dense<0.000000e+00> : vector<8x8xf32>
    %295 = tpu.matmul %294, %4, %cst_70 {dimension_numbers = #tpu.dot_dimension_numbers<[1], [0], [0], [1], [0, 0, 1, 1], [], []>} : vector<8x16xf32>, vector<16x8xf32>, vector<8x8xf32> -> vector<8x8xf32>
    %296 = vector.broadcast %8 : vector<1x8xf32> to vector<8x8xf32>
    %297 = arith.addf %295, %296 : vector<8x8xf32>
    %298 = arith.negf %297 : vector<8x8xf32>
    %299 = math.exp %298 : vector<8x8xf32>
    %cst_71 = arith.constant 1.000000e+00 : f32
    %300 = vector.broadcast %cst_71 : f32 to vector<8x8xf32>
    %301 = arith.addf %300, %299 : vector<8x8xf32>
    %302 = arith.divf %300, %301 : vector<8x8xf32>
    %cst_72 = arith.constant dense<0.000000e+00> : vector<8x8xf32>
    %303 = tpu.matmul %294, %5, %cst_72 {dimension_numbers = #tpu.dot_dimension_numbers<[1], [0], [0], [1], [0, 0, 1, 1], [], []>} : vector<8x16xf32>, vector<16x8xf32>, vector<8x8xf32> -> vector<8x8xf32>
    %304 = vector.broadcast %9 : vector<1x8xf32> to vector<8x8xf32>
    %305 = arith.addf %303, %304 : vector<8x8xf32>
    %306 = arith.negf %305 : vector<8x8xf32>
    %307 = math.exp %306 : vector<8x8xf32>
    %cst_73 = arith.constant 1.000000e+00 : f32
    %308 = vector.broadcast %cst_73 : f32 to vector<8x8xf32>
    %309 = arith.addf %308, %307 : vector<8x8xf32>
    %310 = arith.divf %308, %309 : vector<8x8xf32>
    %cst_74 = arith.constant dense<0.000000e+00> : vector<8x8xf32>
    %311 = tpu.matmul %293, %6, %cst_74 {dimension_numbers = #tpu.dot_dimension_numbers<[1], [0], [0], [1], [0, 0, 1, 1], [], []>} : vector<8x8xf32>, vector<8x8xf32>, vector<8x8xf32> -> vector<8x8xf32>
    %312 = vector.broadcast %10 : vector<1x8xf32> to vector<8x8xf32>
    %313 = arith.addf %311, %312 : vector<8x8xf32>
    %cst_75 = arith.constant dense<0.000000e+00> : vector<8x8xf32>
    %314 = tpu.matmul %3, %7, %cst_75 {dimension_numbers = #tpu.dot_dimension_numbers<[1], [0], [0], [1], [0, 0, 1, 1], [], []>} : vector<8x8xf32>, vector<8x8xf32>, vector<8x8xf32> -> vector<8x8xf32>
    %315 = vector.broadcast %11 : vector<1x8xf32> to vector<8x8xf32>
    %316 = arith.addf %314, %315 : vector<8x8xf32>
    %317 = arith.mulf %302, %316 : vector<8x8xf32>
    %318 = arith.addf %313, %317 : vector<8x8xf32>
    %319 = math.tanh %318 : vector<8x8xf32>
    %cst_76 = arith.constant 1.000000e+00 : f32
    %320 = vector.broadcast %cst_76 : f32 to vector<8x8xf32>
    %321 = arith.subf %320, %310 : vector<8x8xf32>
    %322 = arith.mulf %321, %319 : vector<8x8xf32>
    %323 = arith.mulf %310, %3 : vector<8x8xf32>
    %324 = arith.addf %322, %323 : vector<8x8xf32>
    %cst_77 = arith.constant dense<0.000000e+00> : vector<16x8xf32>
    %325 = tpu.matmul %1, %324, %cst_77 {dimension_numbers = #tpu.dot_dimension_numbers<[1], [0], [0], [1], [0, 0, 1, 1], [], []>} : vector<16x8xf32>, vector<8x8xf32>, vector<16x8xf32> -> vector<16x8xf32>
    %cst_78 = arith.constant dense<0.000000e+00> : vector<16x8xf32>
    %326 = tpu.matmul %0, %325, %cst_78 {dimension_numbers = #tpu.dot_dimension_numbers<[1], [0], [0], [1], [0, 0, 1, 1], [], []>} : vector<16x16xf32>, vector<16x8xf32>, vector<16x8xf32> -> vector<16x8xf32>
    %cst_79 = arith.constant 0.000000e+00 : f32
    %327 = vector.broadcast %cst_79 : f32 to vector<16x8xf32>
    %328 = arith.maximumf %326, %327 : vector<16x8xf32>
    %c0_80 = arith.constant 0 : index
    %c0_81 = arith.constant 0 : index
    %329 = vector.load %arg12[%c0_80, %c0_81] : memref<8x1xf32, #tpu.memory_space<vmem>>, vector<8x1xf32>
    %c0_82 = arith.constant 0 : index
    %c0_83 = arith.constant 0 : index
    %330 = vector.load %arg13[%c0_82, %c0_83] : memref<8x8xf32, #tpu.memory_space<vmem>>, vector<8x8xf32>
    %c0_84 = arith.constant 0 : index
    %c0_85 = arith.constant 0 : index
    %331 = vector.load %arg14[%c0_84, %c0_85] : memref<16x8xf32, #tpu.memory_space<vmem>>, vector<16x8xf32>
    %c0_86 = arith.constant 0 : index
    %c0_87 = arith.constant 0 : index
    %332 = vector.load %arg15[%c0_86, %c0_87] : memref<16x8xf32, #tpu.memory_space<vmem>>, vector<16x8xf32>
    %c0_88 = arith.constant 0 : index
    %c0_89 = arith.constant 0 : index
    %333 = vector.load %arg16[%c0_88, %c0_89] : memref<8x8xf32, #tpu.memory_space<vmem>>, vector<8x8xf32>
    %c0_90 = arith.constant 0 : index
    %c0_91 = arith.constant 0 : index
    %334 = vector.load %arg17[%c0_90, %c0_91] : memref<8x8xf32, #tpu.memory_space<vmem>>, vector<8x8xf32>
    %c0_92 = arith.constant 0 : index
    %c0_93 = arith.constant 0 : index
    %335 = vector.load %arg18[%c0_92, %c0_93] : memref<1x8xf32, #tpu.memory_space<vmem>>, vector<1x8xf32>
    %c0_94 = arith.constant 0 : index
    %c0_95 = arith.constant 0 : index
    %336 = vector.load %arg19[%c0_94, %c0_95] : memref<1x8xf32, #tpu.memory_space<vmem>>, vector<1x8xf32>
    %c0_96 = arith.constant 0 : index
    %c0_97 = arith.constant 0 : index
    %337 = vector.load %arg20[%c0_96, %c0_97] : memref<1x8xf32, #tpu.memory_space<vmem>>, vector<1x8xf32>
    %c0_98 = arith.constant 0 : index
    %c0_99 = arith.constant 0 : index
    %338 = vector.load %arg21[%c0_98, %c0_99] : memref<1x8xf32, #tpu.memory_space<vmem>>, vector<1x8xf32>
    %cst_100 = arith.constant dense<0.000000e+00> : vector<16x1xf32>
    %339 = tpu.matmul %328, %329, %cst_100 {dimension_numbers = #tpu.dot_dimension_numbers<[1], [0], [0], [1], [0, 0, 1, 1], [], []>} : vector<16x8xf32>, vector<8x1xf32>, vector<16x1xf32> -> vector<16x1xf32>
    %340 = math.tanh %339 : vector<16x1xf32>
    %341 = tpu.iota {dimensions = array<i32: 0>} : vector<16x1xi32>
    %342 = arith.sitofp %341 : vector<16x1xi32> to vector<16x1xf32>
    %343 = tpu.iota {dimensions = array<i32: 0>} : vector<8x1xi32>
    %cst_101 = arith.constant 0.000000e+00 : f32
    %344 = vector.broadcast %cst_101 : f32 to vector<8x8xf32>
    %345 = vector.shape_cast %340 : vector<16x1xf32> to vector<1x16x1xf32>
    %cst_102 = arith.constant dense<0xFF800000> : vector<1xf32>
    %346 = vector.multi_reduction <maximumf>, %345, %cst_102 [1, 2] : vector<1x16x1xf32> to vector<1xf32>
    %347 = vector.shape_cast %346 : vector<1xf32> to vector<1x1x1xf32>
    %348 = vector.extract %347[0, 0, 0] : f32 from vector<1x1x1xf32>
    %349 = vector.broadcast %348 : f32 to vector<1x1xf32>
    %350 = vector.broadcast %349 : vector<1x1xf32> to vector<16x1xf32>
    %351 = arith.cmpf oeq, %340, %350 : vector<16x1xf32>
    %cst_103 = arith.constant 1.600000e+01 : f32
    %352 = vector.broadcast %cst_103 : f32 to vector<16x1xf32>
    %353 = arith.select %351, %342, %352 : vector<16x1xi1>, vector<16x1xf32>
    %354 = vector.shape_cast %353 : vector<16x1xf32> to vector<1x16x1xf32>
    %cst_104 = arith.constant dense<0x7F800000> : vector<1xf32>
    %355 = vector.multi_reduction <minimumf>, %354, %cst_104 [1, 2] : vector<1x16x1xf32> to vector<1xf32>
    %356 = vector.shape_cast %355 : vector<1xf32> to vector<1x1x1xf32>
    %357 = vector.extract %356[0, 0, 0] : f32 from vector<1x1x1xf32>
    %358 = vector.broadcast %357 : f32 to vector<1x1xf32>
    %359 = vector.broadcast %358 : vector<1x1xf32> to vector<16x1xf32>
    %360 = arith.cmpf oeq, %342, %359 : vector<16x1xf32>
    %361 = arith.extui %360 : vector<16x1xi1> to vector<16x1xi32>
    %362 = arith.sitofp %361 : vector<16x1xi32> to vector<16x1xf32>
    %363 = arith.mulf %362, %340 : vector<16x1xf32>
    %364 = vector.broadcast %363 : vector<16x1xf32> to vector<16x8xf32>
    %365 = arith.mulf %364, %328 : vector<16x8xf32>
    %cst_105 = arith.constant dense<0.000000e+00> : vector<8xf32>
    %366 = vector.multi_reduction <add>, %365, %cst_105 [0] : vector<16x8xf32> to vector<8xf32>
    %367 = vector.shape_cast %366 : vector<8xf32> to vector<1x8xf32>
    %c0_i32_106 = arith.constant 0 : i32
    %368 = vector.broadcast %c0_i32_106 : i32 to vector<8x1xi32>
    %369 = arith.cmpi eq, %343, %368 : vector<8x1xi32>
    %370 = arith.extui %369 : vector<8x1xi1> to vector<8x1xi32>
    %371 = arith.sitofp %370 : vector<8x1xi32> to vector<8x1xf32>
    %372 = vector.broadcast %371 : vector<8x1xf32> to vector<8x8xf32>
    %373 = vector.broadcast %367 : vector<1x8xf32> to vector<8x8xf32>
    %374 = arith.mulf %372, %373 : vector<8x8xf32>
    %375 = arith.addf %344, %374 : vector<8x8xf32>
    %cst_107 = arith.constant 5.000000e-01 : f32
    %376 = vector.broadcast %cst_107 : f32 to vector<16x1xf32>
    %377 = arith.cmpf ogt, %362, %376 : vector<16x1xf32>
    %cst_108 = arith.constant -3.000000e+00 : f32
    %378 = vector.broadcast %cst_108 : f32 to vector<16x1xf32>
    %379 = arith.select %377, %378, %340 : vector<16x1xi1>, vector<16x1xf32>
    %380 = vector.shape_cast %379 : vector<16x1xf32> to vector<1x16x1xf32>
    %cst_109 = arith.constant dense<0xFF800000> : vector<1xf32>
    %381 = vector.multi_reduction <maximumf>, %380, %cst_109 [1, 2] : vector<1x16x1xf32> to vector<1xf32>
    %382 = vector.shape_cast %381 : vector<1xf32> to vector<1x1x1xf32>
    %383 = vector.extract %382[0, 0, 0] : f32 from vector<1x1x1xf32>
    %384 = vector.broadcast %383 : f32 to vector<1x1xf32>
    %385 = vector.broadcast %384 : vector<1x1xf32> to vector<16x1xf32>
    %386 = arith.cmpf oeq, %379, %385 : vector<16x1xf32>
    %cst_110 = arith.constant 1.600000e+01 : f32
    %387 = vector.broadcast %cst_110 : f32 to vector<16x1xf32>
    %388 = arith.select %386, %342, %387 : vector<16x1xi1>, vector<16x1xf32>
    %389 = vector.shape_cast %388 : vector<16x1xf32> to vector<1x16x1xf32>
    %cst_111 = arith.constant dense<0x7F800000> : vector<1xf32>
    %390 = vector.multi_reduction <minimumf>, %389, %cst_111 [1, 2] : vector<1x16x1xf32> to vector<1xf32>
    %391 = vector.shape_cast %390 : vector<1xf32> to vector<1x1x1xf32>
    %392 = vector.extract %391[0, 0, 0] : f32 from vector<1x1x1xf32>
    %393 = vector.broadcast %392 : f32 to vector<1x1xf32>
    %394 = vector.broadcast %393 : vector<1x1xf32> to vector<16x1xf32>
    %395 = arith.cmpf oeq, %342, %394 : vector<16x1xf32>
    %396 = arith.extui %395 : vector<16x1xi1> to vector<16x1xi32>
    %397 = arith.sitofp %396 : vector<16x1xi32> to vector<16x1xf32>
    %398 = arith.mulf %397, %340 : vector<16x1xf32>
    %399 = vector.broadcast %398 : vector<16x1xf32> to vector<16x8xf32>
    %400 = arith.mulf %399, %328 : vector<16x8xf32>
    %cst_112 = arith.constant dense<0.000000e+00> : vector<8xf32>
    %401 = vector.multi_reduction <add>, %400, %cst_112 [0] : vector<16x8xf32> to vector<8xf32>
    %402 = vector.shape_cast %401 : vector<8xf32> to vector<1x8xf32>
    %c1_i32_113 = arith.constant 1 : i32
    %403 = vector.broadcast %c1_i32_113 : i32 to vector<8x1xi32>
    %404 = arith.cmpi eq, %343, %403 : vector<8x1xi32>
    %405 = arith.extui %404 : vector<8x1xi1> to vector<8x1xi32>
    %406 = arith.sitofp %405 : vector<8x1xi32> to vector<8x1xf32>
    %407 = vector.broadcast %406 : vector<8x1xf32> to vector<8x8xf32>
    %408 = vector.broadcast %402 : vector<1x8xf32> to vector<8x8xf32>
    %409 = arith.mulf %407, %408 : vector<8x8xf32>
    %410 = arith.addf %375, %409 : vector<8x8xf32>
    %cst_114 = arith.constant 5.000000e-01 : f32
    %411 = vector.broadcast %cst_114 : f32 to vector<16x1xf32>
    %412 = arith.cmpf ogt, %397, %411 : vector<16x1xf32>
    %cst_115 = arith.constant -3.000000e+00 : f32
    %413 = vector.broadcast %cst_115 : f32 to vector<16x1xf32>
    %414 = arith.select %412, %413, %379 : vector<16x1xi1>, vector<16x1xf32>
    %415 = vector.shape_cast %414 : vector<16x1xf32> to vector<1x16x1xf32>
    %cst_116 = arith.constant dense<0xFF800000> : vector<1xf32>
    %416 = vector.multi_reduction <maximumf>, %415, %cst_116 [1, 2] : vector<1x16x1xf32> to vector<1xf32>
    %417 = vector.shape_cast %416 : vector<1xf32> to vector<1x1x1xf32>
    %418 = vector.extract %417[0, 0, 0] : f32 from vector<1x1x1xf32>
    %419 = vector.broadcast %418 : f32 to vector<1x1xf32>
    %420 = vector.broadcast %419 : vector<1x1xf32> to vector<16x1xf32>
    %421 = arith.cmpf oeq, %414, %420 : vector<16x1xf32>
    %cst_117 = arith.constant 1.600000e+01 : f32
    %422 = vector.broadcast %cst_117 : f32 to vector<16x1xf32>
    %423 = arith.select %421, %342, %422 : vector<16x1xi1>, vector<16x1xf32>
    %424 = vector.shape_cast %423 : vector<16x1xf32> to vector<1x16x1xf32>
    %cst_118 = arith.constant dense<0x7F800000> : vector<1xf32>
    %425 = vector.multi_reduction <minimumf>, %424, %cst_118 [1, 2] : vector<1x16x1xf32> to vector<1xf32>
    %426 = vector.shape_cast %425 : vector<1xf32> to vector<1x1x1xf32>
    %427 = vector.extract %426[0, 0, 0] : f32 from vector<1x1x1xf32>
    %428 = vector.broadcast %427 : f32 to vector<1x1xf32>
    %429 = vector.broadcast %428 : vector<1x1xf32> to vector<16x1xf32>
    %430 = arith.cmpf oeq, %342, %429 : vector<16x1xf32>
    %431 = arith.extui %430 : vector<16x1xi1> to vector<16x1xi32>
    %432 = arith.sitofp %431 : vector<16x1xi32> to vector<16x1xf32>
    %433 = arith.mulf %432, %340 : vector<16x1xf32>
    %434 = vector.broadcast %433 : vector<16x1xf32> to vector<16x8xf32>
    %435 = arith.mulf %434, %328 : vector<16x8xf32>
    %cst_119 = arith.constant dense<0.000000e+00> : vector<8xf32>
    %436 = vector.multi_reduction <add>, %435, %cst_119 [0] : vector<16x8xf32> to vector<8xf32>
    %437 = vector.shape_cast %436 : vector<8xf32> to vector<1x8xf32>
    %c2_i32_120 = arith.constant 2 : i32
    %438 = vector.broadcast %c2_i32_120 : i32 to vector<8x1xi32>
    %439 = arith.cmpi eq, %343, %438 : vector<8x1xi32>
    %440 = arith.extui %439 : vector<8x1xi1> to vector<8x1xi32>
    %441 = arith.sitofp %440 : vector<8x1xi32> to vector<8x1xf32>
    %442 = vector.broadcast %441 : vector<8x1xf32> to vector<8x8xf32>
    %443 = vector.broadcast %437 : vector<1x8xf32> to vector<8x8xf32>
    %444 = arith.mulf %442, %443 : vector<8x8xf32>
    %445 = arith.addf %410, %444 : vector<8x8xf32>
    %cst_121 = arith.constant 5.000000e-01 : f32
    %446 = vector.broadcast %cst_121 : f32 to vector<16x1xf32>
    %447 = arith.cmpf ogt, %432, %446 : vector<16x1xf32>
    %cst_122 = arith.constant -3.000000e+00 : f32
    %448 = vector.broadcast %cst_122 : f32 to vector<16x1xf32>
    %449 = arith.select %447, %448, %414 : vector<16x1xi1>, vector<16x1xf32>
    %450 = vector.shape_cast %449 : vector<16x1xf32> to vector<1x16x1xf32>
    %cst_123 = arith.constant dense<0xFF800000> : vector<1xf32>
    %451 = vector.multi_reduction <maximumf>, %450, %cst_123 [1, 2] : vector<1x16x1xf32> to vector<1xf32>
    %452 = vector.shape_cast %451 : vector<1xf32> to vector<1x1x1xf32>
    %453 = vector.extract %452[0, 0, 0] : f32 from vector<1x1x1xf32>
    %454 = vector.broadcast %453 : f32 to vector<1x1xf32>
    %455 = vector.broadcast %454 : vector<1x1xf32> to vector<16x1xf32>
    %456 = arith.cmpf oeq, %449, %455 : vector<16x1xf32>
    %cst_124 = arith.constant 1.600000e+01 : f32
    %457 = vector.broadcast %cst_124 : f32 to vector<16x1xf32>
    %458 = arith.select %456, %342, %457 : vector<16x1xi1>, vector<16x1xf32>
    %459 = vector.shape_cast %458 : vector<16x1xf32> to vector<1x16x1xf32>
    %cst_125 = arith.constant dense<0x7F800000> : vector<1xf32>
    %460 = vector.multi_reduction <minimumf>, %459, %cst_125 [1, 2] : vector<1x16x1xf32> to vector<1xf32>
    %461 = vector.shape_cast %460 : vector<1xf32> to vector<1x1x1xf32>
    %462 = vector.extract %461[0, 0, 0] : f32 from vector<1x1x1xf32>
    %463 = vector.broadcast %462 : f32 to vector<1x1xf32>
    %464 = vector.broadcast %463 : vector<1x1xf32> to vector<16x1xf32>
    %465 = arith.cmpf oeq, %342, %464 : vector<16x1xf32>
    %466 = arith.extui %465 : vector<16x1xi1> to vector<16x1xi32>
    %467 = arith.sitofp %466 : vector<16x1xi32> to vector<16x1xf32>
    %468 = arith.mulf %467, %340 : vector<16x1xf32>
    %469 = vector.broadcast %468 : vector<16x1xf32> to vector<16x8xf32>
    %470 = arith.mulf %469, %328 : vector<16x8xf32>
    %cst_126 = arith.constant dense<0.000000e+00> : vector<8xf32>
    %471 = vector.multi_reduction <add>, %470, %cst_126 [0] : vector<16x8xf32> to vector<8xf32>
    %472 = vector.shape_cast %471 : vector<8xf32> to vector<1x8xf32>
    %c3_i32_127 = arith.constant 3 : i32
    %473 = vector.broadcast %c3_i32_127 : i32 to vector<8x1xi32>
    %474 = arith.cmpi eq, %343, %473 : vector<8x1xi32>
    %475 = arith.extui %474 : vector<8x1xi1> to vector<8x1xi32>
    %476 = arith.sitofp %475 : vector<8x1xi32> to vector<8x1xf32>
    %477 = vector.broadcast %476 : vector<8x1xf32> to vector<8x8xf32>
    %478 = vector.broadcast %472 : vector<1x8xf32> to vector<8x8xf32>
    %479 = arith.mulf %477, %478 : vector<8x8xf32>
    %480 = arith.addf %445, %479 : vector<8x8xf32>
    %cst_128 = arith.constant 5.000000e-01 : f32
    %481 = vector.broadcast %cst_128 : f32 to vector<16x1xf32>
    %482 = arith.cmpf ogt, %467, %481 : vector<16x1xf32>
    %cst_129 = arith.constant -3.000000e+00 : f32
    %483 = vector.broadcast %cst_129 : f32 to vector<16x1xf32>
    %484 = arith.select %482, %483, %449 : vector<16x1xi1>, vector<16x1xf32>
    %485 = vector.shape_cast %484 : vector<16x1xf32> to vector<1x16x1xf32>
    %cst_130 = arith.constant dense<0xFF800000> : vector<1xf32>
    %486 = vector.multi_reduction <maximumf>, %485, %cst_130 [1, 2] : vector<1x16x1xf32> to vector<1xf32>
    %487 = vector.shape_cast %486 : vector<1xf32> to vector<1x1x1xf32>
    %488 = vector.extract %487[0, 0, 0] : f32 from vector<1x1x1xf32>
    %489 = vector.broadcast %488 : f32 to vector<1x1xf32>
    %490 = vector.broadcast %489 : vector<1x1xf32> to vector<16x1xf32>
    %491 = arith.cmpf oeq, %484, %490 : vector<16x1xf32>
    %cst_131 = arith.constant 1.600000e+01 : f32
    %492 = vector.broadcast %cst_131 : f32 to vector<16x1xf32>
    %493 = arith.select %491, %342, %492 : vector<16x1xi1>, vector<16x1xf32>
    %494 = vector.shape_cast %493 : vector<16x1xf32> to vector<1x16x1xf32>
    %cst_132 = arith.constant dense<0x7F800000> : vector<1xf32>
    %495 = vector.multi_reduction <minimumf>, %494, %cst_132 [1, 2] : vector<1x16x1xf32> to vector<1xf32>
    %496 = vector.shape_cast %495 : vector<1xf32> to vector<1x1x1xf32>
    %497 = vector.extract %496[0, 0, 0] : f32 from vector<1x1x1xf32>
    %498 = vector.broadcast %497 : f32 to vector<1x1xf32>
    %499 = vector.broadcast %498 : vector<1x1xf32> to vector<16x1xf32>
    %500 = arith.cmpf oeq, %342, %499 : vector<16x1xf32>
    %501 = arith.extui %500 : vector<16x1xi1> to vector<16x1xi32>
    %502 = arith.sitofp %501 : vector<16x1xi32> to vector<16x1xf32>
    %503 = arith.mulf %502, %340 : vector<16x1xf32>
    %504 = vector.broadcast %503 : vector<16x1xf32> to vector<16x8xf32>
    %505 = arith.mulf %504, %328 : vector<16x8xf32>
    %cst_133 = arith.constant dense<0.000000e+00> : vector<8xf32>
    %506 = vector.multi_reduction <add>, %505, %cst_133 [0] : vector<16x8xf32> to vector<8xf32>
    %507 = vector.shape_cast %506 : vector<8xf32> to vector<1x8xf32>
    %c4_i32_134 = arith.constant 4 : i32
    %508 = vector.broadcast %c4_i32_134 : i32 to vector<8x1xi32>
    %509 = arith.cmpi eq, %343, %508 : vector<8x1xi32>
    %510 = arith.extui %509 : vector<8x1xi1> to vector<8x1xi32>
    %511 = arith.sitofp %510 : vector<8x1xi32> to vector<8x1xf32>
    %512 = vector.broadcast %511 : vector<8x1xf32> to vector<8x8xf32>
    %513 = vector.broadcast %507 : vector<1x8xf32> to vector<8x8xf32>
    %514 = arith.mulf %512, %513 : vector<8x8xf32>
    %515 = arith.addf %480, %514 : vector<8x8xf32>
    %cst_135 = arith.constant 5.000000e-01 : f32
    %516 = vector.broadcast %cst_135 : f32 to vector<16x1xf32>
    %517 = arith.cmpf ogt, %502, %516 : vector<16x1xf32>
    %cst_136 = arith.constant -3.000000e+00 : f32
    %518 = vector.broadcast %cst_136 : f32 to vector<16x1xf32>
    %519 = arith.select %517, %518, %484 : vector<16x1xi1>, vector<16x1xf32>
    %520 = vector.shape_cast %519 : vector<16x1xf32> to vector<1x16x1xf32>
    %cst_137 = arith.constant dense<0xFF800000> : vector<1xf32>
    %521 = vector.multi_reduction <maximumf>, %520, %cst_137 [1, 2] : vector<1x16x1xf32> to vector<1xf32>
    %522 = vector.shape_cast %521 : vector<1xf32> to vector<1x1x1xf32>
    %523 = vector.extract %522[0, 0, 0] : f32 from vector<1x1x1xf32>
    %524 = vector.broadcast %523 : f32 to vector<1x1xf32>
    %525 = vector.broadcast %524 : vector<1x1xf32> to vector<16x1xf32>
    %526 = arith.cmpf oeq, %519, %525 : vector<16x1xf32>
    %cst_138 = arith.constant 1.600000e+01 : f32
    %527 = vector.broadcast %cst_138 : f32 to vector<16x1xf32>
    %528 = arith.select %526, %342, %527 : vector<16x1xi1>, vector<16x1xf32>
    %529 = vector.shape_cast %528 : vector<16x1xf32> to vector<1x16x1xf32>
    %cst_139 = arith.constant dense<0x7F800000> : vector<1xf32>
    %530 = vector.multi_reduction <minimumf>, %529, %cst_139 [1, 2] : vector<1x16x1xf32> to vector<1xf32>
    %531 = vector.shape_cast %530 : vector<1xf32> to vector<1x1x1xf32>
    %532 = vector.extract %531[0, 0, 0] : f32 from vector<1x1x1xf32>
    %533 = vector.broadcast %532 : f32 to vector<1x1xf32>
    %534 = vector.broadcast %533 : vector<1x1xf32> to vector<16x1xf32>
    %535 = arith.cmpf oeq, %342, %534 : vector<16x1xf32>
    %536 = arith.extui %535 : vector<16x1xi1> to vector<16x1xi32>
    %537 = arith.sitofp %536 : vector<16x1xi32> to vector<16x1xf32>
    %538 = arith.mulf %537, %340 : vector<16x1xf32>
    %539 = vector.broadcast %538 : vector<16x1xf32> to vector<16x8xf32>
    %540 = arith.mulf %539, %328 : vector<16x8xf32>
    %cst_140 = arith.constant dense<0.000000e+00> : vector<8xf32>
    %541 = vector.multi_reduction <add>, %540, %cst_140 [0] : vector<16x8xf32> to vector<8xf32>
    %542 = vector.shape_cast %541 : vector<8xf32> to vector<1x8xf32>
    %c5_i32_141 = arith.constant 5 : i32
    %543 = vector.broadcast %c5_i32_141 : i32 to vector<8x1xi32>
    %544 = arith.cmpi eq, %343, %543 : vector<8x1xi32>
    %545 = arith.extui %544 : vector<8x1xi1> to vector<8x1xi32>
    %546 = arith.sitofp %545 : vector<8x1xi32> to vector<8x1xf32>
    %547 = vector.broadcast %546 : vector<8x1xf32> to vector<8x8xf32>
    %548 = vector.broadcast %542 : vector<1x8xf32> to vector<8x8xf32>
    %549 = arith.mulf %547, %548 : vector<8x8xf32>
    %550 = arith.addf %515, %549 : vector<8x8xf32>
    %cst_142 = arith.constant 5.000000e-01 : f32
    %551 = vector.broadcast %cst_142 : f32 to vector<16x1xf32>
    %552 = arith.cmpf ogt, %537, %551 : vector<16x1xf32>
    %cst_143 = arith.constant -3.000000e+00 : f32
    %553 = vector.broadcast %cst_143 : f32 to vector<16x1xf32>
    %554 = arith.select %552, %553, %519 : vector<16x1xi1>, vector<16x1xf32>
    %555 = vector.shape_cast %554 : vector<16x1xf32> to vector<1x16x1xf32>
    %cst_144 = arith.constant dense<0xFF800000> : vector<1xf32>
    %556 = vector.multi_reduction <maximumf>, %555, %cst_144 [1, 2] : vector<1x16x1xf32> to vector<1xf32>
    %557 = vector.shape_cast %556 : vector<1xf32> to vector<1x1x1xf32>
    %558 = vector.extract %557[0, 0, 0] : f32 from vector<1x1x1xf32>
    %559 = vector.broadcast %558 : f32 to vector<1x1xf32>
    %560 = vector.broadcast %559 : vector<1x1xf32> to vector<16x1xf32>
    %561 = arith.cmpf oeq, %554, %560 : vector<16x1xf32>
    %cst_145 = arith.constant 1.600000e+01 : f32
    %562 = vector.broadcast %cst_145 : f32 to vector<16x1xf32>
    %563 = arith.select %561, %342, %562 : vector<16x1xi1>, vector<16x1xf32>
    %564 = vector.shape_cast %563 : vector<16x1xf32> to vector<1x16x1xf32>
    %cst_146 = arith.constant dense<0x7F800000> : vector<1xf32>
    %565 = vector.multi_reduction <minimumf>, %564, %cst_146 [1, 2] : vector<1x16x1xf32> to vector<1xf32>
    %566 = vector.shape_cast %565 : vector<1xf32> to vector<1x1x1xf32>
    %567 = vector.extract %566[0, 0, 0] : f32 from vector<1x1x1xf32>
    %568 = vector.broadcast %567 : f32 to vector<1x1xf32>
    %569 = vector.broadcast %568 : vector<1x1xf32> to vector<16x1xf32>
    %570 = arith.cmpf oeq, %342, %569 : vector<16x1xf32>
    %571 = arith.extui %570 : vector<16x1xi1> to vector<16x1xi32>
    %572 = arith.sitofp %571 : vector<16x1xi32> to vector<16x1xf32>
    %573 = arith.mulf %572, %340 : vector<16x1xf32>
    %574 = vector.broadcast %573 : vector<16x1xf32> to vector<16x8xf32>
    %575 = arith.mulf %574, %328 : vector<16x8xf32>
    %cst_147 = arith.constant dense<0.000000e+00> : vector<8xf32>
    %576 = vector.multi_reduction <add>, %575, %cst_147 [0] : vector<16x8xf32> to vector<8xf32>
    %577 = vector.shape_cast %576 : vector<8xf32> to vector<1x8xf32>
    %c6_i32_148 = arith.constant 6 : i32
    %578 = vector.broadcast %c6_i32_148 : i32 to vector<8x1xi32>
    %579 = arith.cmpi eq, %343, %578 : vector<8x1xi32>
    %580 = arith.extui %579 : vector<8x1xi1> to vector<8x1xi32>
    %581 = arith.sitofp %580 : vector<8x1xi32> to vector<8x1xf32>
    %582 = vector.broadcast %581 : vector<8x1xf32> to vector<8x8xf32>
    %583 = vector.broadcast %577 : vector<1x8xf32> to vector<8x8xf32>
    %584 = arith.mulf %582, %583 : vector<8x8xf32>
    %585 = arith.addf %550, %584 : vector<8x8xf32>
    %cst_149 = arith.constant 5.000000e-01 : f32
    %586 = vector.broadcast %cst_149 : f32 to vector<16x1xf32>
    %587 = arith.cmpf ogt, %572, %586 : vector<16x1xf32>
    %cst_150 = arith.constant -3.000000e+00 : f32
    %588 = vector.broadcast %cst_150 : f32 to vector<16x1xf32>
    %589 = arith.select %587, %588, %554 : vector<16x1xi1>, vector<16x1xf32>
    %590 = vector.shape_cast %589 : vector<16x1xf32> to vector<1x16x1xf32>
    %cst_151 = arith.constant dense<0xFF800000> : vector<1xf32>
    %591 = vector.multi_reduction <maximumf>, %590, %cst_151 [1, 2] : vector<1x16x1xf32> to vector<1xf32>
    %592 = vector.shape_cast %591 : vector<1xf32> to vector<1x1x1xf32>
    %593 = vector.extract %592[0, 0, 0] : f32 from vector<1x1x1xf32>
    %594 = vector.broadcast %593 : f32 to vector<1x1xf32>
    %595 = vector.broadcast %594 : vector<1x1xf32> to vector<16x1xf32>
    %596 = arith.cmpf oeq, %589, %595 : vector<16x1xf32>
    %cst_152 = arith.constant 1.600000e+01 : f32
    %597 = vector.broadcast %cst_152 : f32 to vector<16x1xf32>
    %598 = arith.select %596, %342, %597 : vector<16x1xi1>, vector<16x1xf32>
    %599 = vector.shape_cast %598 : vector<16x1xf32> to vector<1x16x1xf32>
    %cst_153 = arith.constant dense<0x7F800000> : vector<1xf32>
    %600 = vector.multi_reduction <minimumf>, %599, %cst_153 [1, 2] : vector<1x16x1xf32> to vector<1xf32>
    %601 = vector.shape_cast %600 : vector<1xf32> to vector<1x1x1xf32>
    %602 = vector.extract %601[0, 0, 0] : f32 from vector<1x1x1xf32>
    %603 = vector.broadcast %602 : f32 to vector<1x1xf32>
    %604 = vector.broadcast %603 : vector<1x1xf32> to vector<16x1xf32>
    %605 = arith.cmpf oeq, %342, %604 : vector<16x1xf32>
    %606 = arith.extui %605 : vector<16x1xi1> to vector<16x1xi32>
    %607 = arith.sitofp %606 : vector<16x1xi32> to vector<16x1xf32>
    %608 = arith.mulf %607, %340 : vector<16x1xf32>
    %609 = vector.broadcast %608 : vector<16x1xf32> to vector<16x8xf32>
    %610 = arith.mulf %609, %328 : vector<16x8xf32>
    %cst_154 = arith.constant dense<0.000000e+00> : vector<8xf32>
    %611 = vector.multi_reduction <add>, %610, %cst_154 [0] : vector<16x8xf32> to vector<8xf32>
    %612 = vector.shape_cast %611 : vector<8xf32> to vector<1x8xf32>
    %c7_i32_155 = arith.constant 7 : i32
    %613 = vector.broadcast %c7_i32_155 : i32 to vector<8x1xi32>
    %614 = arith.cmpi eq, %343, %613 : vector<8x1xi32>
    %615 = arith.extui %614 : vector<8x1xi1> to vector<8x1xi32>
    %616 = arith.sitofp %615 : vector<8x1xi32> to vector<8x1xf32>
    %617 = vector.broadcast %616 : vector<8x1xf32> to vector<8x8xf32>
    %618 = vector.broadcast %612 : vector<1x8xf32> to vector<8x8xf32>
    %619 = arith.mulf %617, %618 : vector<8x8xf32>
    %620 = arith.addf %585, %619 : vector<8x8xf32>
    %621 = tpu.concatenate %620, %330 in 1 : vector<8x8xf32>, vector<8x8xf32> -> vector<8x16xf32>
    %cst_156 = arith.constant dense<0.000000e+00> : vector<8x8xf32>
    %622 = tpu.matmul %621, %331, %cst_156 {dimension_numbers = #tpu.dot_dimension_numbers<[1], [0], [0], [1], [0, 0, 1, 1], [], []>} : vector<8x16xf32>, vector<16x8xf32>, vector<8x8xf32> -> vector<8x8xf32>
    %623 = vector.broadcast %335 : vector<1x8xf32> to vector<8x8xf32>
    %624 = arith.addf %622, %623 : vector<8x8xf32>
    %625 = arith.negf %624 : vector<8x8xf32>
    %626 = math.exp %625 : vector<8x8xf32>
    %cst_157 = arith.constant 1.000000e+00 : f32
    %627 = vector.broadcast %cst_157 : f32 to vector<8x8xf32>
    %628 = arith.addf %627, %626 : vector<8x8xf32>
    %629 = arith.divf %627, %628 : vector<8x8xf32>
    %cst_158 = arith.constant dense<0.000000e+00> : vector<8x8xf32>
    %630 = tpu.matmul %621, %332, %cst_158 {dimension_numbers = #tpu.dot_dimension_numbers<[1], [0], [0], [1], [0, 0, 1, 1], [], []>} : vector<8x16xf32>, vector<16x8xf32>, vector<8x8xf32> -> vector<8x8xf32>
    %631 = vector.broadcast %336 : vector<1x8xf32> to vector<8x8xf32>
    %632 = arith.addf %630, %631 : vector<8x8xf32>
    %633 = arith.negf %632 : vector<8x8xf32>
    %634 = math.exp %633 : vector<8x8xf32>
    %cst_159 = arith.constant 1.000000e+00 : f32
    %635 = vector.broadcast %cst_159 : f32 to vector<8x8xf32>
    %636 = arith.addf %635, %634 : vector<8x8xf32>
    %637 = arith.divf %635, %636 : vector<8x8xf32>
    %cst_160 = arith.constant dense<0.000000e+00> : vector<8x8xf32>
    %638 = tpu.matmul %620, %333, %cst_160 {dimension_numbers = #tpu.dot_dimension_numbers<[1], [0], [0], [1], [0, 0, 1, 1], [], []>} : vector<8x8xf32>, vector<8x8xf32>, vector<8x8xf32> -> vector<8x8xf32>
    %639 = vector.broadcast %337 : vector<1x8xf32> to vector<8x8xf32>
    %640 = arith.addf %638, %639 : vector<8x8xf32>
    %cst_161 = arith.constant dense<0.000000e+00> : vector<8x8xf32>
    %641 = tpu.matmul %330, %334, %cst_161 {dimension_numbers = #tpu.dot_dimension_numbers<[1], [0], [0], [1], [0, 0, 1, 1], [], []>} : vector<8x8xf32>, vector<8x8xf32>, vector<8x8xf32> -> vector<8x8xf32>
    %642 = vector.broadcast %338 : vector<1x8xf32> to vector<8x8xf32>
    %643 = arith.addf %641, %642 : vector<8x8xf32>
    %644 = arith.mulf %629, %643 : vector<8x8xf32>
    %645 = arith.addf %640, %644 : vector<8x8xf32>
    %646 = math.tanh %645 : vector<8x8xf32>
    %cst_162 = arith.constant 1.000000e+00 : f32
    %647 = vector.broadcast %cst_162 : f32 to vector<8x8xf32>
    %648 = arith.subf %647, %637 : vector<8x8xf32>
    %649 = arith.mulf %648, %646 : vector<8x8xf32>
    %650 = arith.mulf %637, %330 : vector<8x8xf32>
    %651 = arith.addf %649, %650 : vector<8x8xf32>
    %cst_163 = arith.constant dense<0.000000e+00> : vector<16x8xf32>
    %652 = tpu.matmul %328, %651, %cst_163 {dimension_numbers = #tpu.dot_dimension_numbers<[1], [0], [0], [1], [0, 0, 1, 1], [], []>} : vector<16x8xf32>, vector<8x8xf32>, vector<16x8xf32> -> vector<16x8xf32>
    %cst_164 = arith.constant dense<0.000000e+00> : vector<16x8xf32>
    %653 = tpu.matmul %0, %652, %cst_164 {dimension_numbers = #tpu.dot_dimension_numbers<[1], [0], [0], [1], [0, 0, 1, 1], [], []>} : vector<16x16xf32>, vector<16x8xf32>, vector<16x8xf32> -> vector<16x8xf32>
    %cst_165 = arith.constant 0.000000e+00 : f32
    %654 = vector.broadcast %cst_165 : f32 to vector<16x8xf32>
    %655 = arith.maximumf %653, %654 : vector<16x8xf32>
    %c0_166 = arith.constant 0 : index
    %c0_167 = arith.constant 0 : index
    %656 = vector.load %arg22[%c0_166, %c0_167] : memref<8x1xf32, #tpu.memory_space<vmem>>, vector<8x1xf32>
    %cst_168 = arith.constant dense<0.000000e+00> : vector<16x1xf32>
    %657 = tpu.matmul %655, %656, %cst_168 {dimension_numbers = #tpu.dot_dimension_numbers<[1], [0], [0], [1], [0, 0, 1, 1], [], []>} : vector<16x8xf32>, vector<8x1xf32>, vector<16x1xf32> -> vector<16x1xf32>
    %c0_169 = arith.constant 0 : index
    %c0_170 = arith.constant 0 : index
    %658 = vector.load %arg23[%c0_169, %c0_170] : memref<1x1xf32, #tpu.memory_space<vmem>>, vector<1x1xf32>
    %659 = vector.broadcast %658 : vector<1x1xf32> to vector<16x1xf32>
    %660 = arith.addf %657, %659 : vector<16x1xf32>
    %c0_171 = arith.constant 0 : index
    %c0_172 = arith.constant 0 : index
    %661 = vector.load %arg24[%c0_171, %c0_172] : memref<16x1xf32, #tpu.memory_space<vmem>>, vector<16x1xf32>
    tpu.vector_store %arg24[%c0_171, %c0_172], %660 {strides = array<i32>} : memref<16x1xf32, #tpu.memory_space<vmem>>, vector<16x1xf32>,
    return
  }
}

</mosaic_0001>

<bundles_post_ra>
// kernel: temporal_gnn_forward.1
= control target key start
LH: loop header
LB: loop body
LE: loop exit
PB: predicated region body
PF: predicated region fallthrough
CT: control target
= control target key end

     0   :  { %vm95_vm0 = vcmask 64512   ;;  %vm184_vm1 = vcmask 7168   ;;  %v179_v17 = vlaneseq  ;;  %v2721_v28 = vmov 0.0   ;;  %s3458_s2 = inlined_call_operand.vmem [shape: f32[8,1], index: 2, kind: input, shape index: {}]   ;;  %s3459_s0 = inlined_call_operand.vmem [shape: f32[16,8], index: 0, kind: input, shape index: {}]   ;;  %s3460_s3 = inlined_call_operand.vmem [shape: f32[8,8], index: 3, kind: input, shape index: {}]   ;;  %s3461_s4 = inlined_call_operand.vmem [shape: f32[16,8], index: 4, kind: input, shape index: {}]   ;;  %s3462_s5 = inlined_call_operand.vmem [shape: f32[16,8], index: 5, kind: input, shape index: {}]   ;;  %s3463_s6 = inlined_call_operand.vmem [shape: f32[8,8], index: 6, kind: input, shape index: {}]   ;;  %s3464_s7 = inlined_call_operand.vmem [shape: f32[8,8], index: 7, kind: input, shape index: {}]   ;;  %s3465_s8 = inlined_call_operand.vmem [shape: f32[1,8], index: 8, kind: input, shape index: {}]   ;;  %s3466_s9 = inlined_call_operand.vmem [shape: f32[1,8], index: 9, kind: input, shape index: {}]   ;;  %s3467_s11 = inlined_call_operand.vmem [shape: f32[1,8], index: 11, kind: input, shape index: {}]   ;;  %s3468_s10 = inlined_call_operand.vmem [shape: f32[1,8], index: 10, kind: input, shape index: {}]   ;;  %s3469_s1 = inlined_call_operand.vmem [shape: f32[16,16], index: 1, kind: input, shape index: {}]   ;;  %s3470_s12 = inlined_call_operand.vmem [shape: f32[8,1], index: 12, kind: input, shape index: {}]   ;;  %s3471_s13 = inlined_call_operand.vmem [shape: f32[8,8], index: 13, kind: input, shape index: {}]   ;;  %s3472_s14 = inlined_call_operand.vmem [shape: f32[16,8], index: 14, kind: input, shape index: {}]   ;;  %s3473_s15 = inlined_call_operand.vmem [shape: f32[16,8], index: 15, kind: input, shape index: {}]   ;;  %s3474_s16 = inlined_call_operand.vmem [shape: f32[8,8], index: 16, kind: input, shape index: {}]   ;;  %s3475_s17 = inlined_call_operand.vmem [shape: f32[8,8], index: 17, kind: input, shape index: {}]   ;;  %s3476_s18 = inlined_call_operand.vmem [shape: f32[1,8], index: 18, kind: input, shape index: {}]   ;;  %s3477_s19 = inlined_call_operand.vmem [shape: f32[1,8], index: 19, kind: input, shape index: {}]   ;;  %s3478_s21 = inlined_call_operand.vmem [shape: f32[1,8], index: 21, kind: input, shape index: {}]   ;;  %s3479_s20 = inlined_call_operand.vmem [shape: f32[1,8], index: 20, kind: input, shape index: {}]   ;;  %s3480_s22 = inlined_call_operand.vmem [shape: f32[8,1], index: 22, kind: input, shape index: {}]   ;;  %s3481_s23 = inlined_call_operand.<no memory space> [shape: f32[1,1], index: 23, kind: input, shape index: {}]   ;;  %s3482_s24 = inlined_call_operand.vmem [shape: f32[16,1], index: 24, kind: output, shape index: {}]  }
   0x1   :  { %3486 = sst [smem:[#allocation3_spill]] %s3458_s2  ;;  %2537 = vmatprep.subr.mxu1 %v2721_v28 }
   0x2   :  { %3487 = sst [smem:[#allocation4_spill]] %s3459_s0  ;;  %v2875_v18 = vshrl.u32 %v179_v17, 7 }
   0x3   :  { %3488 = sst [smem:[#allocation5_spill]] %s3460_s3 }
   0x4   :  { %3489 = sst [smem:[#allocation6_spill]] %s3461_s4  ;;  %v181_v19 = vadd.s32 8, %v2875_v18  ;;  %v2879_v20 = vcvt.s32.f32 %v2875_v18 }
   0x5   :  { %3490 = sst [smem:[#allocation7_spill]] %s3462_s5 }
   0x6   :  { %3491 = sst [smem:[#allocation8_spill]] %s3463_s6  ;;  %v2881_v21 = vcvt.s32.f32 %v181_v19 }
   0x7   :  { %3492 = sst [smem:[#allocation9_spill]] %s3464_s7 }
   0x8   :  { %3493 = sst [smem:[#allocation10_spill]] %s3465_s8 }
   0x9   :  { %3494 = sst [smem:[#allocation11_spill]] %s3466_s9 }
   0xa   :  { %s3495_s27 = sld [smem:[#allocation3_spill]] }
   0xb   :  { %s3496_s3 = sld [smem:[#allocation4_spill]] }
  0x10   :  { %v83_v0 = vld [vmem:[%s3495_s27] sm:$0xff] }
  0x11   :  { %v2856_v1 = vld [vmem:[%s3496_s3] sm:$0xff]  ;;  %v2861_v2 = vld [vmem:[%s3496_s3 + $0x8] sm:$0xff]  ;;  %2532 = vmatprep.subr.mxu0 %v83_v0 }
  0x12   :  { %2534 = vmatprep.mubr.msk.f32.mxu0 %vm95_vm0, %v2856_v1  ;;  %2533 = vmatpush3.msra.mxu0 %v83_v0 }
  0x13   :  { %2535 = vmatmul.mubr.msk.f32.vlgmr.msra.gmra.mxu0 %vm95_vm0, %v2861_v2  ;;  %2544 = vmatprep.subr.mxu0 %v2721_v28 }
  0xd3   :  { %v2536_v3 = vpop.f32.mrf.mxu0 }
  0xd4   :  { %2689 = vtanh.f32 %v2536_v3 }
  0xd5   :  { %v168_v4 = vpop.f32.mrf.mxu0 }
  0xd6   :  { %2691 = vtanh.f32 %v168_v4 }
  0xe1   :  { %v2867_v5 = vpop.eup %2689 }
  0xe2   :  { %v186_v8 = vsel %vm184_vm1, %v2867_v5, -inf }
  0xe3   :  { %v2869_v6 = vpop.eup %2691 }
  0xe4   :  { %v185_v7 = vsel %vm184_vm1, %v2869_v6, -inf }
  0xe5   :  { %v187_v9 = vmax.f32 %v185_v7, %v186_v8 }
  0xe7   :  { %188 = vmax.xlane.f32.xlu0 %v187_v9 }
 0x170   :  { %v189_v10 = vpop.xlane.xlu0 %188 }
 0x171   :  { %v190_v11 = vrot.slane %v189_v10, 4 }
 0x173   :  { %v191_v12 = vmax.f32 %v189_v10, %v190_v11 }
 0x175   :  { %v192_v13 = vrot.slane %v191_v12, 2 }
 0x177   :  { %v193_v14 = vmax.f32 %v191_v12, %v192_v13 }
 0x179   :  { %v194_v15 = vrot.slane %v193_v14, 1 }
 0x17b   :  { %v195_v16 = vmax.f32 %v193_v14, %v194_v15 }
 0x17d   :  { %2619 = vpush %v195_v16 }
 0x1ae   :  { %s2620_s8 = spop %2619 }
 0x1af   :  { %v197_v22 = vstv %s2620_s8 }
 0x1b0   :  { %vm198_vm2 = vcmp.eq.f32.partialorder %v2869_v6, %v197_v22  ;;  %vm199_vm3 = vcmp.eq.f32.partialorder %v2867_v5, %v197_v22 }
 0x1b1   :  { %v200_v23 = vsel %vm198_vm2, %v2879_v20, 16.0  ;;  %v201_v24 = vsel %vm199_vm3, %v2881_v21, 16.0 }
 0x1b2   :  { %v202_v25 = vsel %vm184_vm1, %v200_v23, inf  ;;  %v203_v26 = vsel %vm184_vm1, %v201_v24, inf }
 0x1b3   :  { %v204_v27 = vmin.f32 %v202_v25, %v203_v26 }
 0x1b5   :  { %205 = vmin.xlane.f32.xlu0 %v204_v27 }
 0x23e   :  { %v206_v29 = vpop.xlane.xlu0 %205 }
 0x23f   :  { %v207_v30 = vrot.slane %v206_v29, 4 }
 0x241   :  { %v208_v31 = vmin.f32 %v206_v29, %v207_v30 }
 0x243   :  { %v209_v32 = vrot.slane %v208_v31, 2 }
 0x245   :  { %v210_v33 = vmin.f32 %v208_v31, %v209_v32 }
 0x247   :  { %v211_v34 = vrot.slane %v210_v33, 1 }
 0x249   :  { %v212_v35 = vmin.f32 %v210_v33, %v211_v34 }
 0x24b   :  { %2621 = vpush %v212_v35 }
 0x27c   :  { %s2622_s30 = spop %2621 }
 0x27d   :  { %v214_v36 = vstv %s2622_s30 }
 0x27e   :  { %vm215_vm4 = vcmp.eq.f32.partialorder %v2879_v20, %v214_v36  ;;  %vm216_vm5 = vcmp.eq.f32.partialorder %v2881_v21, %v214_v36 }
 0x27f   :  { %v2894_v37 = vsel %vm215_vm4, 1.0, %v2721_v28  ;;  %v2897_v38 = vsel %vm216_vm5, 1.0, %v2721_v28 }
 0x280   :  { %vm249_vm6 = vcmp.gt.f32.partialorder %v2894_v37, 0.5  ;;  %vm250_vm7 = vcmp.gt.f32.partialorder %v2897_v38, 0.5 }
 0x281   :  { %v251_v39 = vsel %vm249_vm6, -3.0, %v2869_v6  ;;  %v252_v40 = vsel %vm250_vm7, -3.0, %v2867_v5 }
 0x282   :  { %v253_v41 = vsel %vm184_vm1, %v251_v39, -inf  ;;  %v254_v42 = vsel %vm184_vm1, %v252_v40, -inf }
 0x283   :  { %v255_v43 = vmax.f32 %v253_v41, %v254_v42 }
 0x285   :  { %256 = vmax.xlane.f32.xlu1 %v255_v43 }
 0x30e   :  { %v257_v44 = vpop.xlane.xlu1 %256 }
 0x30f   :  { %v258_v45 = vrot.slane %v257_v44, 4 }
 0x311   :  { %v259_v46 = vmax.f32 %v257_v44, %v258_v45 }
 0x313   :  { %v260_v47 = vrot.slane %v259_v46, 2 }
 0x315   :  { %v261_v48 = vmax.f32 %v259_v46, %v260_v47 }
 0x317   :  { %v262_v49 = vrot.slane %v261_v48, 1 }
 0x319   :  { %v263_v50 = vmax.f32 %v261_v48, %v262_v49 }
 0x31b   :  { %2623 = vpush %v263_v50 }
 0x34c   :  { %s2624_s4 = spop %2623 }
 0x34d   :  { %v265_v51 = vstv %s2624_s4  ;;  %s3503_s4 = sld [smem:[#allocation11_spill]] }
 0x34e   :  { %vm266_vm8 = vcmp.eq.f32.partialorder %v251_v39, %v265_v51  ;;  %vm267_vm9 = vcmp.eq.f32.partialorder %v252_v40, %v265_v51 }
 0x34f   :  { %v268_v52 = vsel %vm266_vm8, %v2879_v20, 16.0  ;;  %v269_v53 = vsel %vm267_vm9, %v2881_v21, 16.0 }
 0x350   :  { %v270_v54 = vsel %vm184_vm1, %v268_v52, inf  ;;  %v271_v55 = vsel %vm184_vm1, %v269_v53, inf }
 0x351   :  { %v272_v56 = vmin.f32 %v270_v54, %v271_v55 }
 0x353   :  { %273 = vmin.xlane.f32.xlu1 %v272_v56 }
 0x3dc   :  { %v274_v57 = vpop.xlane.xlu1 %273 }
 0x3dd   :  { %v275_v58 = vrot.slane %v274_v57, 4 }
 0x3df   :  { %v276_v59 = vmin.f32 %v274_v57, %v275_v58 }
 0x3e1   :  { %v277_v60 = vrot.slane %v276_v59, 2 }
 0x3e3   :  { %v278_v61 = vmin.f32 %v276_v59, %v277_v60 }
 0x3e5   :  { %v279_v62 = vrot.slane %v278_v61, 1 }
 0x3e7   :  { %v280_v63 = vmin.f32 %v278_v61, %v279_v62 }
 0x3e9   :  { %2625 = vpush %v280_v63 }
 0x41a   :  { %s2626_s25 = spop %2625 }
 0x41b   :  { %v282_v0 = vstv %s2626_s25 }
 0x41c   :  { %vm283_vm10 = vcmp.eq.f32.partialorder %v2879_v20, %v282_v0  ;;  %vm284_vm11 = vcmp.eq.f32.partialorder %v2881_v21, %v282_v0 }
 0x41d   :  { %v2912_v3 = vsel %vm283_vm10, 1.0, %v2721_v28  ;;  %v2915_v4 = vsel %vm284_vm11, 1.0, %v2721_v28 }
 0x41e   :  { %vm317_vm12 = vcmp.gt.f32.partialorder %v2912_v3, 0.5  ;;  %vm318_vm13 = vcmp.gt.f32.partialorder %v2915_v4, 0.5 }
 0x41f   :  { %v319_v7 = vsel %vm317_vm12, -3.0, %v251_v39  ;;  %v320_v8 = vsel %vm318_vm13, -3.0, %v252_v40 }
 0x420   :  { %v321_v9 = vsel %vm184_vm1, %v319_v7, -inf  ;;  %v322_v10 = vsel %vm184_vm1, %v320_v8, -inf }
 0x421   :  { %v323_v11 = vmax.f32 %v321_v9, %v322_v10 }
 0x423   :  { %324 = vmax.xlane.f32.xlu0 %v323_v11 }
 0x4ac   :  { %v325_v12 = vpop.xlane.xlu0 %324 }
 0x4ad   :  { %v326_v13 = vrot.slane %v325_v12, 4 }
 0x4af   :  { %v327_v14 = vmax.f32 %v325_v12, %v326_v13 }
 0x4b1   :  { %v328_v15 = vrot.slane %v327_v14, 2 }
 0x4b3   :  { %v329_v16 = vmax.f32 %v327_v14, %v328_v15 }
 0x4b5   :  { %v330_v17 = vrot.slane %v329_v16, 1 }
 0x4b7   :  { %v331_v19 = vmax.f32 %v329_v16, %v330_v17 }
 0x4b9   :  { %2627 = vpush %v331_v19 }
 0x4ea   :  { %s2628_s9 = spop %2627 }
 0x4eb   :  { %v333_v22 = vstv %s2628_s9  ;;  %s3497_s9 = sld [smem:[#allocation5_spill]] }
 0x4ec   :  { %vm334_vm14 = vcmp.eq.f32.partialorder %v319_v7, %v333_v22  ;;  %vm335_vm15 = vcmp.eq.f32.partialorder %v320_v8, %v333_v22 }
 0x4ed   :  { %v336_v23 = vsel %vm334_vm14, %v2879_v20, 16.0  ;;  %v337_v24 = vsel %vm335_vm15, %v2881_v21, 16.0 }
 0x4ee   :  { %v338_v25 = vsel %vm184_vm1, %v336_v23, inf  ;;  %v339_v26 = vsel %vm184_vm1, %v337_v24, inf }
 0x4ef   :  { %v340_v27 = vmin.f32 %v338_v25, %v339_v26 }
 0x4f1   :  { %341 = vmin.xlane.f32.xlu1 %v340_v27 }
 0x57a   :  { %v342_v29 = vpop.xlane.xlu1 %341 }
 0x57b   :  { %v343_v30 = vrot.slane %v342_v29, 4 }
 0x57d   :  { %v344_v31 = vmin.f32 %v342_v29, %v343_v30 }
 0x57f   :  { %v345_v32 = vrot.slane %v344_v31, 2 }
 0x581   :  { %v346_v33 = vmin.f32 %v344_v31, %v345_v32 }
 0x583   :  { %v347_v34 = vrot.slane %v346_v33, 1 }
 0x585   :  { %v348_v35 = vmin.f32 %v346_v33, %v347_v34 }
 0x587   :  { %2629 = vpush %v348_v35 }
 0x5b8   :  { %s2630_s5 = spop %2629 }
 0x5b9   :  { %v350_v36 = vstv %s2630_s5  ;;  %s2723_s5 = smov 8  }
 0x5ba   :  { %vm351_vm2 = vcmp.eq.f32.partialorder %v2879_v20, %v350_v36  ;;  %vm352_vm3 = vcmp.eq.f32.partialorder %v2881_v21, %v350_v36 }
 0x5bb   :  { %v2928_v39 = vsel %vm351_vm2, 1.0, %v2721_v28  ;;  %v2931_v40 = vsel %vm352_vm3, 1.0, %v2721_v28 }
 0x5bc   :  { %vm385_vm4 = vcmp.gt.f32.partialorder %v2928_v39, 0.5  ;;  %vm386_vm5 = vcmp.gt.f32.partialorder %v2931_v40, 0.5 }
 0x5bd   :  { %v387_v41 = vsel %vm385_vm4, -3.0, %v319_v7  ;;  %v388_v42 = vsel %vm386_vm5, -3.0, %v320_v8 }
 0x5be   :  { %v389_v43 = vsel %vm184_vm1, %v387_v41, -inf  ;;  %v390_v44 = vsel %vm184_vm1, %v388_v42, -inf }
 0x5bf   :  { %v391_v45 = vmax.f32 %v389_v43, %v390_v44 }
 0x5c1   :  { %392 = vmax.xlane.f32.xlu0 %v391_v45 }
 0x64a   :  { %v393_v46 = vpop.xlane.xlu0 %392 }
 0x64b   :  { %v394_v47 = vrot.slane %v393_v46, 4 }
 0x64d   :  { %v395_v48 = vmax.f32 %v393_v46, %v394_v47 }
 0x64f   :  { %v396_v49 = vrot.slane %v395_v48, 2 }
 0x651   :  { %v397_v50 = vmax.f32 %v395_v48, %v396_v49 }
 0x653   :  { %v398_v51 = vrot.slane %v397_v50, 1 }
 0x655   :  { %v399_v52 = vmax.f32 %v397_v50, %v398_v51 }
 0x657   :  { %2631 = vpush %v399_v52 }
 0x688   :  { %s2632_s0 = spop %2631 }
 0x689   :  { %v401_v53 = vstv %s2632_s0 }
 0x68a   :  { %vm402_vm6 = vcmp.eq.f32.partialorder %v387_v41, %v401_v53  ;;  %vm403_vm7 = vcmp.eq.f32.partialorder %v388_v42, %v401_v53 }
 0x68b   :  { %v404_v54 = vsel %vm402_vm6, %v2879_v20, 16.0  ;;  %v405_v55 = vsel %vm403_vm7, %v2881_v21, 16.0 }
 0x68c   :  { %v406_v56 = vsel %vm184_vm1, %v404_v54, inf  ;;  %v407_v57 = vsel %vm184_vm1, %v405_v55, inf }
 0x68d   :  { %v408_v58 = vmin.f32 %v406_v56, %v407_v57 }
 0x68f   :  { %409 = vmin.xlane.f32.xlu1 %v408_v58 }
 0x718   :  { %v410_v59 = vpop.xlane.xlu1 %409 }
 0x719   :  { %v411_v60 = vrot.slane %v410_v59, 4 }
 0x71b   :  { %v412_v61 = vmin.f32 %v410_v59, %v411_v60 }
 0x71d   :  { %v413_v62 = vrot.slane %v412_v61, 2 }
 0x71f   :  { %v414_v63 = vmin.f32 %v412_v61, %v413_v62 }
 0x721   :  { %v415_v0 = vrot.slane %v414_v63, 1 }
 0x723   :  { %v416_v7 = vmin.f32 %v414_v63, %v415_v0 }
 0x725   :  { %2633 = vpush %v416_v7 }
 0x756   :  { %s2634_s6 = spop %2633 }
 0x757   :  { %v418_v8 = vstv %s2634_s6 }
 0x758   :  { %vm419_vm8 = vcmp.eq.f32.partialorder %v2879_v20, %v418_v8  ;;  %vm420_vm9 = vcmp.eq.f32.partialorder %v2881_v21, %v418_v8 }
 0x759   :  { %v2944_v9 = vsel %vm419_vm8, 1.0, %v2721_v28  ;;  %v2947_v10 = vsel %vm420_vm9, 1.0, %v2721_v28 }
 0x75a   :  { %vm453_vm10 = vcmp.gt.f32.partialorder %v2944_v9, 0.5  ;;  %vm454_vm11 = vcmp.gt.f32.partialorder %v2947_v10, 0.5 }
 0x75b   :  { %v455_v11 = vsel %vm453_vm10, -3.0, %v387_v41  ;;  %v456_v12 = vsel %vm454_vm11, -3.0, %v388_v42 }
 0x75c   :  { %v457_v13 = vsel %vm184_vm1, %v455_v11, -inf  ;;  %v458_v14 = vsel %vm184_vm1, %v456_v12, -inf }
 0x75d   :  { %v459_v15 = vmax.f32 %v457_v13, %v458_v14 }
 0x75f   :  { %460 = vmax.xlane.f32.xlu0 %v459_v15 }
 0x7e8   :  { %v461_v16 = vpop.xlane.xlu0 %460 }
 0x7e9   :  { %v462_v17 = vrot.slane %v461_v16, 4 }
 0x7eb   :  { %v463_v19 = vmax.f32 %v461_v16, %v462_v17 }
 0x7ed   :  { %v464_v22 = vrot.slane %v463_v19, 2 }
 0x7ef   :  { %v465_v23 = vmax.f32 %v463_v19, %v464_v22 }
 0x7f1   :  { %v466_v24 = vrot.slane %v465_v23, 1 }
 0x7f3   :  { %v467_v25 = vmax.f32 %v465_v23, %v466_v24 }
 0x7f5   :  { %2635 = vpush %v467_v25 }
 0x826   :  { %s2636_s26 = spop %2635 }
 0x827   :  { %v469_v26 = vstv %s2636_s26  ;;  %s3498_s26 = sld [smem:[#allocation6_spill]] }
 0x828   :  { %vm470_vm12 = vcmp.eq.f32.partialorder %v455_v11, %v469_v26  ;;  %vm471_vm13 = vcmp.eq.f32.partialorder %v456_v12, %v469_v26 }
 0x829   :  { %v472_v27 = vsel %vm470_vm12, %v2879_v20, 16.0  ;;  %v473_v29 = vsel %vm471_vm13, %v2881_v21, 16.0 }
 0x82a   :  { %v474_v30 = vsel %vm184_vm1, %v472_v27, inf  ;;  %v475_v31 = vsel %vm184_vm1, %v473_v29, inf }
 0x82b   :  { %v476_v32 = vmin.f32 %v474_v30, %v475_v31 }
 0x82d   :  { %477 = vmin.xlane.f32.xlu1 %v476_v32 }
 0x8b6   :  { %v478_v33 = vpop.xlane.xlu1 %477 }
 0x8b7   :  { %v479_v34 = vrot.slane %v478_v33, 4 }
 0x8b9   :  { %v480_v35 = vmin.f32 %v478_v33, %v479_v34 }
 0x8bb   :  { %v481_v36 = vrot.slane %v480_v35, 2 }
 0x8bd   :  { %v482_v41 = vmin.f32 %v480_v35, %v481_v36 }
 0x8bf   :  { %v483_v42 = vrot.slane %v482_v41, 1 }
 0x8c1   :  { %v484_v43 = vmin.f32 %v482_v41, %v483_v42 }
 0x8c3   :  { %2637 = vpush %v484_v43 }
 0x8f4   :  { %s2638_s27 = spop %2637 }
 0x8f5   :  { %v486_v44 = vstv %s2638_s27 }
 0x8f6   :  { %vm487_vm14 = vcmp.eq.f32.partialorder %v2879_v20, %v486_v44  ;;  %vm488_vm15 = vcmp.eq.f32.partialorder %v2881_v21, %v486_v44 }
 0x8f7   :  { %v2960_v45 = vsel %vm487_vm14, 1.0, %v2721_v28  ;;  %v2963_v46 = vsel %vm488_vm15, 1.0, %v2721_v28 }
 0x8f8   :  { %vm521_vm2 = vcmp.gt.f32.partialorder %v2960_v45, 0.5  ;;  %vm522_vm3 = vcmp.gt.f32.partialorder %v2963_v46, 0.5 }
 0x8f9   :  { %v523_v47 = vsel %vm521_vm2, -3.0, %v455_v11  ;;  %v524_v48 = vsel %vm522_vm3, -3.0, %v456_v12 }
 0x8fa   :  { %v525_v49 = vsel %vm184_vm1, %v523_v47, -inf  ;;  %v526_v50 = vsel %vm184_vm1, %v524_v48, -inf }
 0x8fb   :  { %v527_v51 = vmax.f32 %v525_v49, %v526_v50 }
 0x8fd   :  { %528 = vmax.xlane.f32.xlu0 %v527_v51 }
 0x986   :  { %v529_v52 = vpop.xlane.xlu0 %528 }
 0x987   :  { %v530_v53 = vrot.slane %v529_v52, 4 }
 0x989   :  { %v531_v54 = vmax.f32 %v529_v52, %v530_v53 }
 0x98b   :  { %v532_v55 = vrot.slane %v531_v54, 2 }
 0x98d   :  { %v533_v56 = vmax.f32 %v531_v54, %v532_v55 }
 0x98f   :  { %v534_v57 = vrot.slane %v533_v56, 1 }
 0x991   :  { %v535_v58 = vmax.f32 %v533_v56, %v534_v57 }
 0x993   :  { %2639 = vpush %v535_v58 }
 0x9c4   :  { %s2640_s28 = spop %2639 }
 0x9c5   :  { %v537_v59 = vstv %s2640_s28 }
 0x9c6   :  { %vm538_vm4 = vcmp.eq.f32.partialorder %v523_v47, %v537_v59  ;;  %vm539_vm5 = vcmp.eq.f32.partialorder %v524_v48, %v537_v59 }
 0x9c7   :  { %v540_v60 = vsel %vm538_vm4, %v2879_v20, 16.0  ;;  %v541_v61 = vsel %vm539_vm5, %v2881_v21, 16.0 }
 0x9c8   :  { %v542_v62 = vsel %vm184_vm1, %v540_v60, inf  ;;  %v543_v63 = vsel %vm184_vm1, %v541_v61, inf }
 0x9c9   :  { %v544_v0 = vmin.f32 %v542_v62, %v543_v63  ;;  %v221_v63 = vmul.f32 %v2869_v6, %v2894_v37 }
 0x9cb   :  { %545 = vmin.xlane.f32.xlu1 %v544_v0  ;;  %v494_v0 = vmul.f32 %v2867_v5, %v2963_v46 }
 0xa54   :  { %v546_v7 = vpop.xlane.xlu1 %545 }
 0xa55   :  { %v547_v8 = vrot.slane %v546_v7, 4 }
 0xa57   :  { %v548_v11 = vmin.f32 %v546_v7, %v547_v8 }
 0xa59   :  { %v549_v12 = vrot.slane %v548_v11, 2 }
 0xa5b   :  { %v550_v13 = vmin.f32 %v548_v11, %v549_v12 }
 0xa5d   :  { %v551_v14 = vrot.slane %v550_v13, 1 }
 0xa5f   :  { %v552_v15 = vmin.f32 %v550_v13, %v551_v14 }
 0xa61   :  { %2641 = vpush %v552_v15 }
 0xa92   :  { %s2642_s7 = spop %2641 }
 0xa93   :  { %v554_v16 = vstv %s2642_s7  ;;  %s3499_s7 = sld [smem:[#allocation7_spill]] }
 0xa94   :  { %vm555_vm6 = vcmp.eq.f32.partialorder %v2879_v20, %v554_v16  ;;  %vm556_vm7 = vcmp.eq.f32.partialorder %v2881_v21, %v554_v16 }
 0xa95   :  { %v2976_v17 = vsel %vm555_vm6, 1.0, %v2721_v28  ;;  %v2432_v19 = vsel %vm556_vm7, 1.0, %v2721_v28  ;;  %vm2724_vm6 = vmmov 0   ;;  %vm244_vm7 = vcmp.eq.s32.totalorder %v2875_v18, 0 }
 0xa96   :  { %vm589_vm8 = vcmp.gt.f32.partialorder %v2976_v17, 0.5  ;;  %vm590_vm9 = vcmp.gt.f32.partialorder %v2432_v19, 0.5  ;;  %v562_v7 = vmul.f32 %v2867_v5, %v2432_v19  ;;  %2541 = vmatprep.mubr.msk.f32.mxu1 %vm2724_vm6, %v2721_v28  ;;  %2548 = vmatprep.mubr.msk.f32.mxu0 %vm2724_vm6, %v2721_v28 }
 0xa97   :  { %v591_v22 = vsel %vm589_vm8, -3.0, %v523_v47  ;;  %v592_v23 = vsel %vm590_vm9, -3.0, %v524_v48  ;;  %v2722_v47 = vmov 0   ;;  %vm312_vm8 = vcmp.eq.s32.totalorder %v2875_v18, 1 }
 0xa98   :  { %v593_v24 = vsel %vm184_vm1, %v591_v22, -inf  ;;  %v594_v25 = vsel %vm184_vm1, %v592_v23, -inf  ;;  %2687 = vset.pattern.permute.xlu0 %v2722_v47  ;;  %2688 = vset.pattern.permute.xlu1 %v2722_v47  ;;  %v86_v47 = vld [vmem:[%s3498_s26 + $0x8] sm:$0xff]  ;;  %vm380_vm9 = vcmp.eq.s32.totalorder %v2875_v18, 2 }
 0xa99   :  { %v595_v26 = vmax.f32 %v593_v24, %v594_v25  ;;  %2538 = vmatpush3.msra.mxu1 %v86_v47 }
 0xa9a   :  { %2539 = vmatprep.subr.mxu1 %v2721_v28 }
 0xa9b   :  { %596 = vmax.xlane.f32.xlu0 %v595_v26  ;;  %v222_v26 = vmul.f32 %v2867_v5, %v2897_v38  ;;  %v425_v38 = vmul.f32 %v2869_v6, %v2944_v9 }
 0xb24   :  { %v597_v27 = vpop.xlane.xlu0 %596 }
 0xb25   :  { %v598_v29 = vrot.slane %v597_v27, 4 }
 0xb27   :  { %v599_v30 = vmax.f32 %v597_v27, %v598_v29  ;;  %v289_v27 = vmul.f32 %v2869_v6, %v2912_v3  ;;  %v290_v29 = vmul.f32 %v2867_v5, %v2915_v4  ;;  %v426_v3 = vmul.f32 %v2867_v5, %v2947_v10 }
 0xb28   :  { %v493_v4 = vmul.f32 %v2869_v6, %v2960_v45 }
 0xb29   :  { %v600_v31 = vrot.slane %v599_v30, 2 }
 0xb2b   :  { %v601_v32 = vmax.f32 %v599_v30, %v600_v31  ;;  %v357_v30 = vmul.f32 %v2869_v6, %v2928_v39  ;;  %v358_v31 = vmul.f32 %v2867_v5, %v2931_v40  ;;  %v561_v39 = vmul.f32 %v2869_v6, %v2976_v17 }
 0xb2d   :  { %v602_v33 = vrot.slane %v601_v32, 1 }
 0xb2f   :  { %v603_v34 = vmax.f32 %v601_v32, %v602_v33 }
 0xb31   :  { %2643 = vpush %v603_v34 }
 0xb62   :  { %s2644_s29 = spop %2643 }
 0xb63   :  { %v605_v35 = vstv %s2644_s29 }
 0xb64   :  { %vm606_vm10 = vcmp.eq.f32.partialorder %v591_v22, %v605_v35  ;;  %vm607_vm11 = vcmp.eq.f32.partialorder %v592_v23, %v605_v35 }
 0xb65   :  { %v608_v36 = vsel %vm606_vm10, %v2879_v20, 16.0  ;;  %v609_v41 = vsel %vm607_vm11, %v2881_v21, 16.0  ;;  %vm448_vm10 = vcmp.eq.s32.totalorder %v2875_v18, 3  ;;  %vm516_vm11 = vcmp.eq.s32.totalorder %v2875_v18, 4 }
 0xb66   :  { %v610_v42 = vsel %vm184_vm1, %v608_v36, inf  ;;  %v611_v43 = vsel %vm184_vm1, %v609_v41, inf }
 0xb67   :  { %v612_v44 = vmin.f32 %v610_v42, %v611_v43 }
 0xb69   :  { %613 = vmin.xlane.f32.xlu1 %v612_v44  ;;  %v3030_v44 = vld [vmem:[%s3497_s9] sm:$0xff]  ;;  %s3500_s9 = sld [smem:[#allocation8_spill]] }
 0xbf2   :  { %v614_v48 = vpop.xlane.xlu1 %613 }
 0xbf3   :  { %v615_v49 = vrot.slane %v614_v48, 4 }
 0xbf5   :  { %v616_v50 = vmin.f32 %v614_v48, %v615_v49  ;;  %v87_v48 = vld [vmem:[%s3499_s7] sm:$0xff] }
 0xbf7   :  { %v617_v51 = vrot.slane %v616_v50, 2 }
 0xbf9   :  { %v618_v52 = vmin.f32 %v616_v50, %v617_v51 }
 0xbfb   :  { %v619_v53 = vrot.slane %v618_v52, 1 }
 0xbfd   :  { %v620_v54 = vmin.f32 %v618_v52, %v619_v53 }
 0xbff   :  { %2645 = vpush %v620_v54 }
 0xc30   :  { %s2646_s2 = spop %2645 }
 0xc31   :  { %v622_v55 = vstv %s2646_s2  ;;  %s3502_s2 = sld [smem:[#allocation10_spill]] }
 0xc32   :  { %vm623_vm12 = vcmp.eq.f32.partialorder %v2879_v20, %v622_v55  ;;  %vm624_vm13 = vcmp.eq.f32.partialorder %v2881_v21, %v622_v55 }
 0xc33   :  { %v2434_v56 = vsel %vm623_vm12, 1.0, %v2721_v28  ;;  %v2435_v57 = vsel %vm624_vm13, 1.0, %v2721_v28  ;;  %vm584_vm12 = vcmp.eq.s32.totalorder %v2875_v18, 5  ;;  %vm652_vm13 = vcmp.eq.s32.totalorder %v2875_v18, 6 }
 0xc34   :  { %vm657_vm14 = vcmp.gt.f32.partialorder %v2434_v56, 0.5  ;;  %vm658_vm15 = vcmp.gt.f32.partialorder %v2435_v57, 0.5  ;;  %v630_v8 = vmul.f32 %v2867_v5, %v2435_v57  ;;  %v629_v32 = vmul.f32 %v2869_v6, %v2434_v56 }
 0xc35   :  { %v659_v58 = vsel %vm657_vm14, -3.0, %v591_v22  ;;  %v660_v59 = vsel %vm658_vm15, -3.0, %v592_v23  ;;  %vm720_vm14 = vcmp.eq.s32.totalorder %v2875_v18, 7  ;;  %vm736_vm15 = vcmask 130048  }
 0xc36   :  { %v661_v60 = vsel %vm184_vm1, %v659_v58, -inf  ;;  %v662_v61 = vsel %vm184_vm1, %v660_v59, -inf }
 0xc37   :  { %v663_v62 = vmax.f32 %v661_v60, %v662_v61 }
 0xc39   :  { %664 = vmax.xlane.f32.xlu0 %v663_v62 }
 0xc4f   :  { %225 = vperm.xlu0 %2687, %v221_v63  }
 0xc53   :  { %502 = vperm.xlu0 %2687, %v494_v0  }
 0xc57   :  { %570 = vperm.xlu0 %2687, %v562_v7  }
 0xc5b   :  { %638 = vperm.xlu0 %2687, %v630_v8  }
 0xcc2   :  { %v665_v11 = vpop.xlane.xlu0 %664 }
 0xcc3   :  { %v666_v12 = vrot.slane %v665_v11, 4 }
 0xcc5   :  { %v667_v13 = vmax.f32 %v665_v11, %v666_v12 }
 0xcc7   :  { %v668_v14 = vrot.slane %v667_v13, 2 }
 0xcc9   :  { %v669_v15 = vmax.f32 %v667_v13, %v668_v14 }
 0xcca   :  { %v226_v56 = vpop.permute.xlu0 %225 }
 0xccb   :  { %v670_v16 = vrot.slane %v669_v15, 1  ;;  %v233_v0 = vmul.f32 %v226_v56, %v2856_v1 }
 0xccd   :  { %v671_v22 = vmax.f32 %v669_v15, %v670_v16 }
 0xccf   :  { %2647 = vpush %v671_v22 }
 0xd00   :  { %s2648_s8 = spop %2647 }
 0xd01   :  { %v673_v37 = vstv %s2648_s8 }
 0xd02   :  { %vm674_vm2 = vcmp.eq.f32.partialorder %v659_v58, %v673_v37  ;;  %vm675_vm3 = vcmp.eq.f32.partialorder %v660_v59, %v673_v37  ;;  %v503_v58 = vpop.permute.xlu0 %502  ;;  %v235_v37 = vsel %vm95_vm0, %v233_v0, 0.0 }
 0xd03   :  { %v676_v46 = vsel %vm674_vm2, %v2879_v20, 16.0  ;;  %v677_v19 = vsel %vm675_vm3, %v2881_v21, 16.0 }
 0xd04   :  { %v678_v23 = vsel %vm184_vm1, %v676_v46, inf  ;;  %v679_v24 = vsel %vm184_vm1, %v677_v19, inf  ;;  %v506_v46 = vmul.f32 %v503_v58, %v2861_v2 }
 0xd05   :  { %v680_v25 = vmin.f32 %v678_v23, %v679_v24 }
 0xd06   :  { %v571_v7 = vpop.permute.xlu0 %570 }
 0xd07   :  { %681 = vmin.xlane.f32.xlu1 %v680_v25 }
 0xd18   :  { %230 = vperm.xlu1 %2688, %v222_v26  }
 0xd1c   :  { %293 = vperm.xlu1 %2688, %v289_v27  }
 0xd20   :  { %298 = vperm.xlu1 %2688, %v290_v29   ;;  %v639_v29 = vpop.permute.xlu0 %638 }
 0xd24   :  { %361 = vperm.xlu1 %2688, %v357_v30  }
 0xd28   :  { %366 = vperm.xlu1 %2688, %v358_v31   ;;  %v574_v31 = vmul.f32 %v571_v7, %v2861_v2 }
 0xd2c   :  { %429 = vperm.xlu1 %2688, %v425_v38  }
 0xd30   :  { %434 = vperm.xlu1 %2688, %v426_v3  }
 0xd34   :  { %497 = vperm.xlu1 %2688, %v493_v4  }
 0xd38   :  { %565 = vperm.xlu1 %2688, %v561_v39  }
 0xd3c   :  { %633 = vperm.xlu1 %2688, %v629_v32  }
 0xd90   :  { %v682_v40 = vpop.xlane.xlu1 %681 }
 0xd91   :  { %v683_v33 = vrot.slane %v682_v40, 4 }
 0xd93   :  { %v684_v34 = vmin.f32 %v682_v40, %v683_v33  ;;  %v508_v40 = vsel %vm95_vm0, %v506_v46, 0.0  ;;  %v642_v33 = vmul.f32 %v639_v29, %v2861_v2 }
 0xd94   :  { %v231_v49 = vpop.permute.xlu1 %230 }
 0xd95   :  { %v685_v9 = vrot.slane %v684_v34, 2  ;;  %v234_v60 = vmul.f32 %v231_v49, %v2861_v2 }
 0xd97   :  { %v686_v35 = vmin.f32 %v684_v34, %v685_v9  ;;  %v236_v13 = vsel %vm95_vm0, %v234_v60, 0.0 }
 0xd98   :  { %v294_v50 = vpop.permute.xlu1 %293  ;;  %v237_v24 = vadd.f32 %v236_v13, %v235_v37 }
 0xd99   :  { %v687_v36 = vrot.slane %v686_v35, 1  ;;  %v301_v62 = vmul.f32 %v294_v50, %v2856_v1 }
 0xd9a   :  { %v238_v34 = vrot.slane %v237_v24, 4 }
 0xd9b   :  { %v688_v41 = vmin.f32 %v686_v35, %v687_v36  ;;  %v303_v14 = vsel %vm95_vm0, %v301_v62, 0.0 }
 0xd9c   :  { %v299_v51 = vpop.permute.xlu1 %298  ;;  %v239_v47 = vadd.f32 %v238_v34, %v237_v24 }
 0xd9d   :  { %2649 = vpush %v688_v41  ;;  %v302_v59 = vmul.f32 %v299_v51, %v2861_v2  ;;  %v576_v41 = vsel %vm95_vm0, %v574_v31, 0.0 }
 0xd9f   :  { %v304_v8 = vsel %vm95_vm0, %v302_v59, 0.0 }
 0xda0   :  { %v362_v52 = vpop.permute.xlu1 %361  ;;  %v305_v19 = vadd.f32 %v304_v8, %v303_v14  ;;  %v3085_v14 = vsel %vm244_vm7, 1.0, %v2721_v28 }
 0xda1   :  { %v369_v11 = vmul.f32 %v362_v52, %v2856_v1  ;;  %v240_v52 = vrot.slane %v239_v47, 2 }
 0xda2   :  { %v306_v39 = vrot.slane %v305_v19, 4 }
 0xda3   :  { %v371_v25 = vsel %vm95_vm0, %v369_v11, 0.0  ;;  %v241_v59 = vadd.f32 %v240_v52, %v239_v47 }
 0xda4   :  { %v367_v53 = vpop.permute.xlu1 %366 }
 0xda5   :  { %v370_v63 = vmul.f32 %v367_v53, %v2861_v2  ;;  %v242_v8 = vrot.slane %v241_v59, 1 }
 0xda7   :  { %v372_v15 = vsel %vm95_vm0, %v370_v63, 0.0 }
 0xda8   :  { %v430_v54 = vpop.permute.xlu1 %429  ;;  %v373_v30 = vadd.f32 %v372_v15, %v371_v25 }
 0xda9   :  { %v437_v16 = vmul.f32 %v430_v54, %v2856_v1 }
 0xdaa   :  { %v374_v35 = vrot.slane %v373_v30, 4 }
 0xdab   :  { %v439_v38 = vsel %vm95_vm0, %v437_v16, 0.0 }
 0xdac   :  { %v435_v55 = vpop.permute.xlu1 %434 }
 0xdad   :  { %v438_v12 = vmul.f32 %v435_v55, %v2861_v2 }
 0xdaf   :  { %v440_v26 = vsel %vm95_vm0, %v438_v12, 0.0 }
 0xdb0   :  { %v498_v57 = vpop.permute.xlu1 %497  ;;  %v441_v32 = vadd.f32 %v440_v26, %v439_v38 }
 0xdb1   :  { %v505_v22 = vmul.f32 %v498_v57, %v2856_v1 }
 0xdb3   :  { %v507_v3 = vsel %vm95_vm0, %v505_v22, 0.0 }
 0xdb4   :  { %v566_v61 = vpop.permute.xlu1 %565  ;;  %v509_v36 = vadd.f32 %v508_v40, %v507_v3 }
 0xdb5   :  { %v573_v27 = vmul.f32 %v566_v61, %v2856_v1 }
 0xdb7   :  { %v575_v9 = vsel %vm95_vm0, %v573_v27, 0.0 }
 0xdb8   :  { %v634_v23 = vpop.permute.xlu1 %633 }
 0xdb9   :  { %v641_v4 = vmul.f32 %v634_v23, %v2856_v1  ;;  %v3089_v23 = vsel %vm312_vm8, 1.0, %v2721_v28 }
 0xdce   :  { %s2650_s30 = spop %2649 }
 0xdcf   :  { %v690_v10 = vstv %s2650_s30 }
 0xdd0   :  { %vm691_vm4 = vcmp.eq.f32.partialorder %v2879_v20, %v690_v10  ;;  %vm692_vm5 = vcmp.eq.f32.partialorder %v2881_v21, %v690_v10  ;;  %v643_v10 = vsel %vm95_vm0, %v641_v4, 0.0 }
 0xdd1   :  { %v2437_v45 = vsel %vm691_vm4, 1.0, %v2721_v28  ;;  %v2438_v17 = vsel %vm692_vm5, 1.0, %v2721_v28 }
 0xdd2   :  { %v697_v42 = vmul.f32 %v2869_v6, %v2437_v45  ;;  %v698_v43 = vmul.f32 %v2867_v5, %v2438_v17  ;;  %v88_v6 = vld [vmem:[%s3499_s7 + $0x8] sm:$0xff]  ;;  %v85_v5 = vld [vmem:[%s3498_s26] sm:$0xff]  ;;  %v307_v45 = vadd.f32 %v306_v39, %v305_v19  ;;  %v442_v17 = vrot.slane %v441_v32, 4  ;;  %s3501_s26 = sld [smem:[#allocation9_spill]] }
 0xdd3   :  { %2545 = vmatpush3.msra.mxu0 %v88_v6  ;;  %2540 = vmatpush3.msra.mxu1 %v85_v5  ;;  %v375_v6 = vadd.f32 %v374_v35, %v373_v30  ;;  %v510_v5 = vrot.slane %v509_v36, 4  ;;  %v243_v19 = vadd.f32 %v242_v8, %v241_v59  ;;  %v3095_v30 = vsel %vm380_vm9, 1.0, %v2721_v28 }
 0xdd4   :  { %701 = vperm.xlu1 %2688, %v697_v42   ;;  %706 = vperm.xlu0 %2687, %v698_v43   ;;  %v577_v42 = vadd.f32 %v576_v41, %v575_v9  ;;  %v644_v43 = vsel %vm95_vm0, %v642_v33, 0.0  ;;  %v308_v49 = vrot.slane %v307_v45, 2  ;;  %v443_v50 = vadd.f32 %v442_v17, %v441_v32 }
 0xdd5   :  { %2546 = vmatprep.subr.mxu0 %v2721_v28  ;;  %2551 = vmatprep.subr.mxu1 %v2721_v28  ;;  %v376_v53 = vrot.slane %v375_v6, 2  ;;  %v511_v54 = vadd.f32 %v510_v5, %v509_v36  ;;  %v3103_v32 = vsel %vm448_vm10, 1.0, %v2721_v28  ;;  %v3108_v35 = vsel %vm516_vm11, 1.0, %v2721_v28 }
 0xdd6   :  { %2547 = vmatpush3.msra.mxu0 %v87_v48  ;;  %v645_v48 = vadd.f32 %v644_v43, %v643_v10  ;;  %v578_v51 = vrot.slane %v577_v42, 4  ;;  %v309_v56 = vadd.f32 %v308_v49, %v307_v45  ;;  %v444_v57 = vrot.slane %v443_v50, 2 }
 0xdd7   :  { %2556 = vmatprep.subr.mxu0 %v2721_v28  ;;  %v377_v60 = vadd.f32 %v376_v53, %v375_v6  ;;  %v512_v61 = vrot.slane %v511_v54, 2  ;;  %v3113_v17 = vsel %vm584_vm12, 1.0, %v2721_v28  ;;  %v3117_v5 = vsel %vm652_vm13, 1.0, %v2721_v28 }
 0xdd8   :  { %726 = vrot.lane.b32.xlu1 %v3030_v44, %s2723_s5  ;;  %v646_v55 = vrot.slane %v645_v48, 4  ;;  %v579_v58 = vadd.f32 %v578_v51, %v577_v42  ;;  %v310_v63 = vrot.slane %v309_v56, 1  ;;  %v445_v0 = vadd.f32 %v444_v57, %v443_v50 }
 0xdd9   :  { %v378_v11 = vrot.slane %v377_v60, 1  ;;  %v513_v12 = vadd.f32 %v512_v61, %v511_v54  ;;  %v3123_v54 = vsel %vm720_vm14, 1.0, %v2721_v28  ;;  %v89_v61 = vld [vmem:[%s3500_s9] sm:$0xff] }
 0xdda   :  { %v647_v62 = vadd.f32 %v646_v55, %v645_v48  ;;  %v580_v7 = vrot.slane %v579_v58, 2  ;;  %v311_v15 = vadd.f32 %v310_v63, %v309_v56  ;;  %v446_v16 = vrot.slane %v445_v0, 1  ;;  %v2717_v63 = vld [vmem:[%s3496_s3] sm:$0xff] }
 0xddb   :  { %v379_v26 = vadd.f32 %v378_v11, %v377_v60  ;;  %v514_v27 = vrot.slane %v513_v12, 1 }
 0xddc   :  { %v648_v13 = vrot.slane %v647_v62, 2  ;;  %v581_v22 = vadd.f32 %v580_v7, %v579_v58  ;;  %v315_v3 = vmul.f32 %v3089_v23, %v311_v15  ;;  %v447_v4 = vadd.f32 %v446_v16, %v445_v0  ;;  %v2440_v0 = vld [vmem:[%s3502_s2] ss:$0 sm:$0xff] }
 0xddd   :  { %v383_v40 = vmul.f32 %v3095_v30, %v379_v26  ;;  %v515_v33 = vadd.f32 %v514_v27, %v513_v12  ;;  %v2443_v16 = vld [vmem:[%s3503_s4] ss:$0 sm:$0xff] }
 0xdde   :  { %v649_v29 = vadd.f32 %v648_v13, %v647_v62  ;;  %v451_v41 = vmul.f32 %v3103_v32, %v447_v4  ;;  %v90_v62 = vld [vmem:[%s3501_s26] sm:$0xff] }
 0xddf   :  { %v519_v43 = vmul.f32 %v3108_v35, %v515_v33  ;;  %v2446_v4 = vld [vmem:[%s3468_s10] ss:$0 sm:$0xff] }
 0xde0   :  { %v650_v34 = vrot.slane %v649_v29, 1 }
 0xde2   :  { %v651_v47 = vadd.f32 %v650_v34, %v649_v29 }
 0xde4   :  { %v655_v53 = vmul.f32 %v3117_v5, %v651_v47 }
 0xe4f   :  { %v702_v37 = vpop.permute.xlu1 %701  ;;  %v707_v46 = vpop.permute.xlu0 %706 }
 0xe50   :  { %v709_v24 = vmul.f32 %v702_v37, %v2856_v1  ;;  %v710_v25 = vmul.f32 %v707_v46, %v2861_v2  ;;  %v582_v1 = vrot.slane %v581_v22, 1  ;;  %v247_v2 = vmul.f32 %v3085_v14, %v243_v19 }
 0xe52   :  { %v711_v31 = vsel %vm95_vm0, %v709_v24, 0.0  ;;  %v712_v38 = vsel %vm95_vm0, %v710_v25, 0.0  ;;  %v316_v36 = vadd.f32 %v315_v3, %v247_v2  ;;  %v583_v10 = vadd.f32 %v582_v1, %v581_v22 }
 0xe53   :  { %v713_v39 = vadd.f32 %v712_v38, %v711_v31  ;;  %v727_v59 = vpop.permute.xlu1 %726  ;;  %v2448_v31 = vld [vmem:[%s3467_s11] ss:$0 sm:$0xff] }
 0xe54   :  { %v384_v42 = vadd.f32 %v383_v40, %v316_v36  ;;  %v587_v49 = vmul.f32 %v3113_v17, %v583_v10 }
 0xe55   :  { %v714_v9 = vrot.slane %v713_v39, 4 }
 0xe56   :  { %v452_v48 = vadd.f32 %v451_v41, %v384_v42  ;;  %v79_v42 = vld [vmem:[%s3469_s1] sm:$0xff] }
 0xe57   :  { %v715_v45 = vadd.f32 %v714_v9, %v713_v39 }
 0xe58   :  { %v520_v52 = vadd.f32 %v519_v43, %v452_v48 }
 0xe59   :  { %v716_v6 = vrot.slane %v715_v45, 2 }
 0xe5a   :  { %v588_v56 = vadd.f32 %v587_v49, %v520_v52 }
 0xe5b   :  { %v717_v50 = vadd.f32 %v716_v6, %v715_v45  ;;  %v2718_v45 = vld [vmem:[%s3496_s3 + $0x8] sm:$0xff]  ;;  %v1220_v6 = vld [vmem:[%s3470_s12] sm:$0xff] }
 0xe5c   :  { %v656_v57 = vadd.f32 %v655_v53, %v588_v56 }
 0xe5d   :  { %v718_v51 = vrot.slane %v717_v50, 1 }
 0xe5f   :  { %v719_v55 = vadd.f32 %v718_v51, %v717_v50 }
 0xe61   :  { %v723_v58 = vmul.f32 %v3123_v54, %v719_v55 }
 0xe63   :  { %v724_v60 = vadd.f32 %v723_v58, %v656_v57 }
 0xe65   :  { %v729_v18 = vsel %vm95_vm0, %v724_v60, %v727_v59 }
 0xe66   :  { %2542 = vmatmul.mubr.msk.f32.vlgmr.msra.gmra.mxu1 %vm736_vm15, %v729_v18  ;;  %2549 = vmatmul.mubr.msk.f32.vlgmr.msra.gmra.mxu0 %vm736_vm15, %v729_v18 }
 0xe67   :  { %2552 = vmatpush3.msra.mxu1 %v89_v61  ;;  %2553 = vmatprep.mubr.msk.f32.mxu1 %vm2724_vm6, %v2721_v28 }
 0xe68   :  { %2557 = vmatpush3.msra.mxu0 %v90_v62  ;;  %2558 = vmatprep.mubr.msk.f32.mxu0 %vm2724_vm6, %v2721_v28 }
 0xe6a   :  { %2554 = vmatmul.mubr.msk.f32.vlgmr.msra.gmra.mxu1 %vm95_vm0, %v724_v60  ;;  %2559 = vmatmul.mubr.msk.f32.vlgmr.msra.gmra.mxu0 %vm95_vm0, %v3030_v44 }
 0xe6b   :  { %2563 = vmatprep.mubr.msk.f32.mxu1 %vm95_vm0, %v2717_v63  ;;  %2570 = vmatprep.mubr.msk.f32.mxu0 %vm736_vm15, %v79_v42 }
 0xf26   :  { %v806_v7 = vpop.f32.mrf.mxu1  ;;  %v888_v8 = vpop.f32.mrf.mxu0 }
 0xf27   :  { %v807_v11 = vadd.f32 %v2440_v0, %v806_v7  ;;  %v889_v24 = vadd.f32 %v2443_v16, %v888_v8 }
 0xf28   :  { %v2543_v12 = vpop.f32.mrf.mxu1  ;;  %v2550_v13 = vpop.f32.mrf.mxu0 }
 0xf29   :  { %v2442_v15 = vmul.f32 -1.442695, %v807_v11  ;;  %v2445_v25 = vmul.f32 -1.442695, %v889_v24 }
 0xf2a   :  { %v973_v22 = vpop.f32.mrf.mxu1  ;;  %v1051_v37 = vpop.f32.mrf.mxu0 }
 0xf2b   :  { %2693 = vpow2.f32 %v2442_v15  ;;  %v1052_v3 = vadd.f32 %v2448_v31, %v1051_v37  ;;  %v974_v39 = vadd.f32 %v2446_v4, %v973_v22 }
 0xf2c   :  { %v2555_v46 = vpop.f32.mrf.mxu1  ;;  %v2560_v19 = vpop.f32.mrf.mxu0  ;;  %2695 = vpow2.f32 %v2445_v25 }
 0xf38   :  { %v2694_v26 = vpop.eup %2693 }
 0xf39   :  { %v813_v27 = vadd.f32 1.0, %v2694_v26  ;;  %v2696_v29 = vpop.eup %2695 }
 0xf3a   :  { %v895_v38 = vadd.f32 1.0, %v2696_v29 }
 0xf3b   :  { %2697 = vrcp.f32 %v813_v27 }
 0xf3c   :  { %2699 = vrcp.f32 %v895_v38 }
 0xf48   :  { %v2698_v1 = vpop.eup %2697 }
 0xf49   :  { %v1055_v2 = vmul.f32 %v2698_v1, %v1052_v3  ;;  %v2700_v33 = vpop.eup %2699 }
 0xf4a   :  { %v1058_v34 = vsub.f32 1.0, %v2700_v33  ;;  %v1060_v41 = vmul.f32 %v2700_v33, %v3030_v44  ;;  %v80_v44 = vld [vmem:[%s3469_s1 + $0x8] sm:$0xff] }
 0xf4b   :  { %v1056_v40 = vadd.f32 %v1055_v2, %v974_v39 }
 0xf4d   :  { %2701 = vtanh.f32 %v1056_v40 }
 0xf5a   :  { %v2702_v9 = vpop.eup %2701 }
 0xf5b   :  { %v1059_v36 = vmul.f32 %v2702_v9, %v1058_v34 }
 0xf5d   :  { %v1061_v10 = vadd.f32 %v1060_v41, %v1059_v36 }
 0xf5f   :  { %2561 = vmatprep.subr.mxu1 %v1061_v10 }
 0xf60   :  { %2562 = vmatpush3.msra.mxu1 %v1061_v10 }
 0xf61   :  { %2564 = vmatmul.mubr.msk.f32.vlgmr.msra.gmra.mxu1 %vm95_vm0, %v2718_v45  ;;  %2573 = vmatprep.subr.mxu1 %v1220_v6 }
 0xf62   :  { %2574 = vmatpush3.msra.mxu1 %v1220_v6 }
 0xf63   :  { %2585 = vmatprep.subr.mxu1 %v2721_v28 }
0x1021   :  { %v2565_v43 = vpop.f32.mrf.mxu1 }
0x1022   :  { %2566 = vmatprep.subr.mxu0 %v2565_v43 }
0x1023   :  { %v1128_v47 = vpop.f32.mrf.mxu1  ;;  %2567 = vmatpush3.msra.mxu0 %v2565_v43 }
0x1024   :  { %2568 = vmatprep.subr.mxu0 %v1128_v47 }
0x1025   :  { %2569 = vmatpush3.msra.mxu0 %v1128_v47 }
0x1026   :  { %2571 = vmatmul.mubr.msk.f32.vlgmr.msra.gmra.mxu0 %vm736_vm15, %v80_v44  ;;  %2578 = vmatprep.subr.mxu0 %v2721_v28 }
0x1027   :  { %2582 = vmatprep.mubr.msk.f32.mxu0 %vm2724_vm6, %v2721_v28 }
0x10e6   :  { %v2572_v48 = vpop.f32.mrf.mxu0 }
0x10e7   :  { %v3180_v51 = vmax.f32 %v2572_v48, 0.0 }
0x10e8   :  { %v1209_v49 = vpop.f32.mrf.mxu0 }
0x10e9   :  { %v3178_v50 = vmax.f32 %v1209_v49, 0.0 }
0x10eb   :  { %2575 = vmatprep.mubr.msk.f32.mxu1 %vm95_vm0, %v3178_v50 }
0x10ec   :  { %2576 = vmatmul.mubr.msk.f32.vlgmr.msra.gmra.mxu1 %vm95_vm0, %v3180_v51 }
0x10ed   :  { %2589 = vmatprep.mubr.msk.f32.mxu1 %vm2724_vm6, %v2721_v28 }
0x11ac   :  { %v2577_v52 = vpop.f32.mrf.mxu1 }
0x11ad   :  { %2703 = vtanh.f32 %v2577_v52 }
0x11ae   :  { %v1304_v53 = vpop.f32.mrf.mxu1 }
0x11af   :  { %2705 = vtanh.f32 %v1304_v53 }
0x11ba   :  { %v3188_v55 = vpop.eup %2703 }
0x11bb   :  { %v1316_v58 = vsel %vm184_vm1, %v3188_v55, -inf }
0x11bc   :  { %v3190_v56 = vpop.eup %2705 }
0x11bd   :  { %v1315_v57 = vsel %vm184_vm1, %v3190_v56, -inf }
0x11be   :  { %v1317_v59 = vmax.f32 %v1315_v57, %v1316_v58 }
0x11c0   :  { %1318 = vmax.xlane.f32.xlu0 %v1317_v59 }
0x1249   :  { %v1319_v60 = vpop.xlane.xlu0 %1318 }
0x124a   :  { %v1320_v61 = vrot.slane %v1319_v60, 4 }
0x124c   :  { %v1321_v18 = vmax.f32 %v1319_v60, %v1320_v61 }
0x124e   :  { %v1322_v62 = vrot.slane %v1321_v18, 2 }
0x1250   :  { %v1323_v63 = vmax.f32 %v1321_v18, %v1322_v62 }
0x1252   :  { %v1324_v0 = vrot.slane %v1323_v63, 1 }
0x1254   :  { %v1325_v7 = vmax.f32 %v1323_v63, %v1324_v0 }
0x1256   :  { %2651 = vpush %v1325_v7 }
0x1287   :  { %s2652_s12 = spop %2651 }
0x1288   :  { %v1327_v8 = vstv %s2652_s12 }
0x1289   :  { %vm1328_vm2 = vcmp.eq.f32.partialorder %v3190_v56, %v1327_v8  ;;  %vm1329_vm3 = vcmp.eq.f32.partialorder %v3188_v55, %v1327_v8 }
0x128a   :  { %v1330_v11 = vsel %vm1328_vm2, %v2879_v20, 16.0  ;;  %v1331_v12 = vsel %vm1329_vm3, %v2881_v21, 16.0 }
0x128b   :  { %v1332_v13 = vsel %vm184_vm1, %v1330_v11, inf  ;;  %v1333_v15 = vsel %vm184_vm1, %v1331_v12, inf }
0x128c   :  { %v1334_v16 = vmin.f32 %v1332_v13, %v1333_v15 }
0x128e   :  { %1335 = vmin.xlane.f32.xlu1 %v1334_v16 }
0x1317   :  { %v1336_v22 = vpop.xlane.xlu1 %1335 }
0x1318   :  { %v1337_v37 = vrot.slane %v1336_v22, 4 }
0x131a   :  { %v1338_v46 = vmin.f32 %v1336_v22, %v1337_v37 }
0x131c   :  { %v1339_v19 = vrot.slane %v1338_v46, 2 }
0x131e   :  { %v1340_v24 = vmin.f32 %v1338_v46, %v1339_v19 }
0x1320   :  { %v1341_v25 = vrot.slane %v1340_v24, 1 }
0x1322   :  { %v1342_v26 = vmin.f32 %v1340_v24, %v1341_v25 }
0x1324   :  { %2653 = vpush %v1342_v26 }
0x1355   :  { %s2654_s2 = spop %2653 }
0x1356   :  { %v1344_v27 = vstv %s2654_s2 }
0x1357   :  { %vm1345_vm4 = vcmp.eq.f32.partialorder %v2879_v20, %v1344_v27  ;;  %vm1346_vm5 = vcmp.eq.f32.partialorder %v2881_v21, %v1344_v27 }
0x1358   :  { %v3205_v29 = vsel %vm1345_vm4, 1.0, %v2721_v28  ;;  %v3208_v31 = vsel %vm1346_vm5, 1.0, %v2721_v28 }
0x1359   :  { %vm1376_vm7 = vcmp.gt.f32.partialorder %v3205_v29, 0.5  ;;  %vm1377_vm8 = vcmp.gt.f32.partialorder %v3208_v31, 0.5 }
0x135a   :  { %v1378_v38 = vsel %vm1376_vm7, -3.0, %v3190_v56  ;;  %v1379_v3 = vsel %vm1377_vm8, -3.0, %v3188_v55 }
0x135b   :  { %v1380_v4 = vsel %vm184_vm1, %v1378_v38, -inf  ;;  %v1381_v1 = vsel %vm184_vm1, %v1379_v3, -inf }
0x135c   :  { %v1382_v39 = vmax.f32 %v1380_v4, %v1381_v1 }
0x135e   :  { %1383 = vmax.xlane.f32.xlu0 %v1382_v39 }
0x13e7   :  { %v1384_v2 = vpop.xlane.xlu0 %1383 }
0x13e8   :  { %v1385_v40 = vrot.slane %v1384_v2, 4 }
0x13ea   :  { %v1386_v33 = vmax.f32 %v1384_v2, %v1385_v40 }
0x13ec   :  { %v1387_v34 = vrot.slane %v1386_v33, 2 }
0x13ee   :  { %v1388_v9 = vmax.f32 %v1386_v33, %v1387_v34 }
0x13f0   :  { %v1389_v36 = vrot.slane %v1388_v9, 1 }
0x13f2   :  { %v1390_v41 = vmax.f32 %v1388_v9, %v1389_v36 }
0x13f4   :  { %2655 = vpush %v1390_v41 }
0x1425   :  { %s2656_s8 = spop %2655 }
0x1426   :  { %v1392_v10 = vstv %s2656_s8 }
0x1427   :  { %vm1393_vm9 = vcmp.eq.f32.partialorder %v1378_v38, %v1392_v10  ;;  %vm1394_vm10 = vcmp.eq.f32.partialorder %v1379_v3, %v1392_v10 }
0x1428   :  { %v1395_v45 = vsel %vm1393_vm9, %v2879_v20, 16.0  ;;  %v1396_v42 = vsel %vm1394_vm10, %v2881_v21, 16.0 }
0x1429   :  { %v1397_v43 = vsel %vm184_vm1, %v1395_v45, inf  ;;  %v1398_v47 = vsel %vm184_vm1, %v1396_v42, inf }
0x142a   :  { %v1399_v44 = vmin.f32 %v1397_v43, %v1398_v47 }
0x142c   :  { %1400 = vmin.xlane.f32.xlu0 %v1399_v44 }
0x14b5   :  { %v1401_v6 = vpop.xlane.xlu0 %1400 }
0x14b6   :  { %v1402_v48 = vrot.slane %v1401_v6, 4 }
0x14b8   :  { %v1403_v49 = vmin.f32 %v1401_v6, %v1402_v48 }
0x14ba   :  { %v1404_v52 = vrot.slane %v1403_v49, 2 }
0x14bc   :  { %v1405_v53 = vmin.f32 %v1403_v49, %v1404_v52 }
0x14be   :  { %v1406_v57 = vrot.slane %v1405_v53, 1 }
0x14c0   :  { %v1407_v58 = vmin.f32 %v1405_v53, %v1406_v57 }
0x14c2   :  { %2657 = vpush %v1407_v58 }
0x14f3   :  { %s2658_s30 = spop %2657 }
0x14f4   :  { %v1409_v59 = vstv %s2658_s30 }
0x14f5   :  { %vm1410_vm11 = vcmp.eq.f32.partialorder %v2879_v20, %v1409_v59  ;;  %vm1411_vm12 = vcmp.eq.f32.partialorder %v2881_v21, %v1409_v59 }
0x14f6   :  { %v3223_v60 = vsel %vm1410_vm11, 1.0, %v2721_v28  ;;  %v3226_v61 = vsel %vm1411_vm12, 1.0, %v2721_v28 }
0x14f7   :  { %vm1441_vm13 = vcmp.gt.f32.partialorder %v3223_v60, 0.5  ;;  %vm1442_vm14 = vcmp.gt.f32.partialorder %v3226_v61, 0.5 }
0x14f8   :  { %v1443_v18 = vsel %vm1441_vm13, -3.0, %v1378_v38  ;;  %v1444_v62 = vsel %vm1442_vm14, -3.0, %v1379_v3 }
0x14f9   :  { %v1445_v63 = vsel %vm184_vm1, %v1443_v18, -inf  ;;  %v1446_v0 = vsel %vm184_vm1, %v1444_v62, -inf }
0x14fa   :  { %v1447_v7 = vmax.f32 %v1445_v63, %v1446_v0 }
0x14fc   :  { %1448 = vmax.xlane.f32.xlu1 %v1447_v7 }
0x1585   :  { %v1449_v8 = vpop.xlane.xlu1 %1448 }
0x1586   :  { %v1450_v11 = vrot.slane %v1449_v8, 4 }
0x1588   :  { %v1451_v12 = vmax.f32 %v1449_v8, %v1450_v11 }
0x158a   :  { %v1452_v13 = vrot.slane %v1451_v12, 2 }
0x158c   :  { %v1453_v15 = vmax.f32 %v1451_v12, %v1452_v13 }
0x158e   :  { %v1454_v16 = vrot.slane %v1453_v15, 1 }
0x1590   :  { %v1455_v22 = vmax.f32 %v1453_v15, %v1454_v16 }
0x1592   :  { %2659 = vpush %v1455_v22 }
0x15c3   :  { %s2660_s4 = spop %2659 }
0x15c4   :  { %v1457_v37 = vstv %s2660_s4 }
0x15c5   :  { %vm1458_vm2 = vcmp.eq.f32.partialorder %v1443_v18, %v1457_v37  ;;  %vm1459_vm3 = vcmp.eq.f32.partialorder %v1444_v62, %v1457_v37 }
0x15c6   :  { %v1460_v46 = vsel %vm1458_vm2, %v2879_v20, 16.0  ;;  %v1461_v19 = vsel %vm1459_vm3, %v2881_v21, 16.0 }
0x15c7   :  { %v1462_v24 = vsel %vm184_vm1, %v1460_v46, inf  ;;  %v1463_v25 = vsel %vm184_vm1, %v1461_v19, inf }
0x15c8   :  { %v1464_v26 = vmin.f32 %v1462_v24, %v1463_v25 }
0x15ca   :  { %1465 = vmin.xlane.f32.xlu0 %v1464_v26 }
0x1653   :  { %v1466_v27 = vpop.xlane.xlu0 %1465 }
0x1654   :  { %v1467_v38 = vrot.slane %v1466_v27, 4 }
0x1656   :  { %v1468_v3 = vmin.f32 %v1466_v27, %v1467_v38 }
0x1658   :  { %v1469_v4 = vrot.slane %v1468_v3, 2 }
0x165a   :  { %v1470_v1 = vmin.f32 %v1468_v3, %v1469_v4 }
0x165c   :  { %v1471_v39 = vrot.slane %v1470_v1, 1 }
0x165e   :  { %v1472_v2 = vmin.f32 %v1470_v1, %v1471_v39 }
0x1660   :  { %2661 = vpush %v1472_v2 }
0x1691   :  { %s2662_s25 = spop %2661 }
0x1692   :  { %v1474_v40 = vstv %s2662_s25 }
0x1693   :  { %vm1475_vm4 = vcmp.eq.f32.partialorder %v2879_v20, %v1474_v40  ;;  %vm1476_vm5 = vcmp.eq.f32.partialorder %v2881_v21, %v1474_v40 }
0x1694   :  { %v3239_v33 = vsel %vm1475_vm4, 1.0, %v2721_v28  ;;  %v3242_v34 = vsel %vm1476_vm5, 1.0, %v2721_v28 }
0x1695   :  { %vm1506_vm7 = vcmp.gt.f32.partialorder %v3239_v33, 0.5  ;;  %vm1507_vm8 = vcmp.gt.f32.partialorder %v3242_v34, 0.5 }
0x1696   :  { %v1508_v9 = vsel %vm1506_vm7, -3.0, %v1443_v18  ;;  %v1509_v36 = vsel %vm1507_vm8, -3.0, %v1444_v62 }
0x1697   :  { %v1510_v41 = vsel %vm184_vm1, %v1508_v9, -inf  ;;  %v1511_v10 = vsel %vm184_vm1, %v1509_v36, -inf }
0x1698   :  { %v1512_v45 = vmax.f32 %v1510_v41, %v1511_v10 }
0x169a   :  { %1513 = vmax.xlane.f32.xlu1 %v1512_v45 }
0x1723   :  { %v1514_v42 = vpop.xlane.xlu1 %1513 }
0x1724   :  { %v1515_v43 = vrot.slane %v1514_v42, 4 }
0x1726   :  { %v1516_v47 = vmax.f32 %v1514_v42, %v1515_v43 }
0x1728   :  { %v1517_v44 = vrot.slane %v1516_v47, 2 }
0x172a   :  { %v1518_v6 = vmax.f32 %v1516_v47, %v1517_v44 }
0x172c   :  { %v1519_v48 = vrot.slane %v1518_v6, 1 }
0x172e   :  { %v1520_v49 = vmax.f32 %v1518_v6, %v1519_v48 }
0x1730   :  { %2663 = vpush %v1520_v49 }
0x1761   :  { %s2664_s9 = spop %2663 }
0x1762   :  { %v1522_v52 = vstv %s2664_s9 }
0x1763   :  { %vm1523_vm9 = vcmp.eq.f32.partialorder %v1508_v9, %v1522_v52  ;;  %vm1524_vm10 = vcmp.eq.f32.partialorder %v1509_v36, %v1522_v52 }
0x1764   :  { %v1525_v53 = vsel %vm1523_vm9, %v2879_v20, 16.0  ;;  %v1526_v57 = vsel %vm1524_vm10, %v2881_v21, 16.0 }
0x1765   :  { %v1527_v58 = vsel %vm184_vm1, %v1525_v53, inf  ;;  %v1528_v59 = vsel %vm184_vm1, %v1526_v57, inf }
0x1766   :  { %v1529_v18 = vmin.f32 %v1527_v58, %v1528_v59 }
0x1768   :  { %1530 = vmin.xlane.f32.xlu0 %v1529_v18 }
0x17f1   :  { %v1531_v62 = vpop.xlane.xlu0 %1530 }
0x17f2   :  { %v1532_v63 = vrot.slane %v1531_v62, 4 }
0x17f4   :  { %v1533_v0 = vmin.f32 %v1531_v62, %v1532_v63 }
0x17f6   :  { %v1534_v7 = vrot.slane %v1533_v0, 2 }
0x17f8   :  { %v1535_v8 = vmin.f32 %v1533_v0, %v1534_v7 }
0x17fa   :  { %v1536_v11 = vrot.slane %v1535_v8, 1 }
0x17fc   :  { %v1537_v12 = vmin.f32 %v1535_v8, %v1536_v11 }
0x17fe   :  { %2665 = vpush %v1537_v12 }
0x182f   :  { %s2666_s0 = spop %2665 }
0x1830   :  { %v1539_v13 = vstv %s2666_s0 }
0x1831   :  { %vm1540_vm11 = vcmp.eq.f32.partialorder %v2879_v20, %v1539_v13  ;;  %vm1541_vm12 = vcmp.eq.f32.partialorder %v2881_v21, %v1539_v13 }
0x1832   :  { %v3255_v15 = vsel %vm1540_vm11, 1.0, %v2721_v28  ;;  %v3258_v16 = vsel %vm1541_vm12, 1.0, %v2721_v28 }
0x1833   :  { %vm1571_vm13 = vcmp.gt.f32.partialorder %v3255_v15, 0.5  ;;  %vm1572_vm14 = vcmp.gt.f32.partialorder %v3258_v16, 0.5 }
0x1834   :  { %v1573_v22 = vsel %vm1571_vm13, -3.0, %v1508_v9  ;;  %v1574_v37 = vsel %vm1572_vm14, -3.0, %v1509_v36 }
0x1835   :  { %v1575_v46 = vsel %vm184_vm1, %v1573_v22, -inf  ;;  %v1576_v19 = vsel %vm184_vm1, %v1574_v37, -inf }
0x1836   :  { %v1577_v24 = vmax.f32 %v1575_v46, %v1576_v19 }
0x1838   :  { %1578 = vmax.xlane.f32.xlu1 %v1577_v24 }
0x18c1   :  { %v1579_v25 = vpop.xlane.xlu1 %1578 }
0x18c2   :  { %v1580_v26 = vrot.slane %v1579_v25, 4 }
0x18c4   :  { %v1581_v27 = vmax.f32 %v1579_v25, %v1580_v26 }
0x18c6   :  { %v1582_v38 = vrot.slane %v1581_v27, 2 }
0x18c8   :  { %v1583_v3 = vmax.f32 %v1581_v27, %v1582_v38 }
0x18ca   :  { %v1584_v4 = vrot.slane %v1583_v3, 1 }
0x18cc   :  { %v1585_v1 = vmax.f32 %v1583_v3, %v1584_v4 }
0x18ce   :  { %2667 = vpush %v1585_v1 }
0x18ff   :  { %s2668_s6 = spop %2667 }
0x1900   :  { %v1587_v39 = vstv %s2668_s6 }
0x1901   :  { %vm1588_vm2 = vcmp.eq.f32.partialorder %v1573_v22, %v1587_v39  ;;  %vm1589_vm3 = vcmp.eq.f32.partialorder %v1574_v37, %v1587_v39 }
0x1902   :  { %v1590_v2 = vsel %vm1588_vm2, %v2879_v20, 16.0  ;;  %v1591_v40 = vsel %vm1589_vm3, %v2881_v21, 16.0 }
0x1903   :  { %v1592_v9 = vsel %vm184_vm1, %v1590_v2, inf  ;;  %v1593_v36 = vsel %vm184_vm1, %v1591_v40, inf }
0x1904   :  { %v1594_v41 = vmin.f32 %v1592_v9, %v1593_v36 }
0x1906   :  { %1595 = vmin.xlane.f32.xlu0 %v1594_v41 }
0x198f   :  { %v1596_v10 = vpop.xlane.xlu0 %1595 }
0x1990   :  { %v1597_v45 = vrot.slane %v1596_v10, 4 }
0x1992   :  { %v1598_v42 = vmin.f32 %v1596_v10, %v1597_v45 }
0x1994   :  { %v1599_v43 = vrot.slane %v1598_v42, 2 }
0x1996   :  { %v1600_v47 = vmin.f32 %v1598_v42, %v1599_v43 }
0x1998   :  { %v1601_v44 = vrot.slane %v1600_v47, 1 }
0x199a   :  { %v1602_v6 = vmin.f32 %v1600_v47, %v1601_v44 }
0x199c   :  { %2669 = vpush %v1602_v6 }
0x19cd   :  { %s2670_s11 = spop %2669 }
0x19ce   :  { %v1604_v48 = vstv %s2670_s11 }
0x19cf   :  { %vm1605_vm4 = vcmp.eq.f32.partialorder %v2879_v20, %v1604_v48  ;;  %vm1606_vm5 = vcmp.eq.f32.partialorder %v2881_v21, %v1604_v48 }
0x19d0   :  { %v3271_v49 = vsel %vm1605_vm4, 1.0, %v2721_v28  ;;  %v3274_v52 = vsel %vm1606_vm5, 1.0, %v2721_v28 }
0x19d1   :  { %vm1636_vm7 = vcmp.gt.f32.partialorder %v3271_v49, 0.5  ;;  %vm1637_vm8 = vcmp.gt.f32.partialorder %v3274_v52, 0.5 }
0x19d2   :  { %v1638_v53 = vsel %vm1636_vm7, -3.0, %v1573_v22  ;;  %v1639_v57 = vsel %vm1637_vm8, -3.0, %v1574_v37 }
0x19d3   :  { %v1640_v58 = vsel %vm184_vm1, %v1638_v53, -inf  ;;  %v1641_v59 = vsel %vm184_vm1, %v1639_v57, -inf }
0x19d4   :  { %v1642_v18 = vmax.f32 %v1640_v58, %v1641_v59 }
0x19d6   :  { %1643 = vmax.xlane.f32.xlu1 %v1642_v18 }
0x1a5f   :  { %v1644_v62 = vpop.xlane.xlu1 %1643 }
0x1a60   :  { %v1645_v63 = vrot.slane %v1644_v62, 4 }
0x1a62   :  { %v1646_v0 = vmax.f32 %v1644_v62, %v1645_v63 }
0x1a64   :  { %v1647_v7 = vrot.slane %v1646_v0, 2 }
0x1a66   :  { %v1648_v8 = vmax.f32 %v1646_v0, %v1647_v7 }
0x1a68   :  { %v1649_v11 = vrot.slane %v1648_v8, 1 }
0x1a6a   :  { %v1650_v12 = vmax.f32 %v1648_v8, %v1649_v11 }
0x1a6c   :  { %2671 = vpush %v1650_v12 }
0x1a9d   :  { %s2672_s26 = spop %2671 }
0x1a9e   :  { %v1652_v13 = vstv %s2672_s26 }
0x1a9f   :  { %vm1653_vm9 = vcmp.eq.f32.partialorder %v1638_v53, %v1652_v13  ;;  %vm1654_vm10 = vcmp.eq.f32.partialorder %v1639_v57, %v1652_v13 }
0x1aa0   :  { %v1655_v22 = vsel %vm1653_vm9, %v2879_v20, 16.0  ;;  %v1656_v37 = vsel %vm1654_vm10, %v2881_v21, 16.0 }
0x1aa1   :  { %v1657_v46 = vsel %vm184_vm1, %v1655_v22, inf  ;;  %v1658_v19 = vsel %vm184_vm1, %v1656_v37, inf }
0x1aa2   :  { %v1659_v24 = vmin.f32 %v1657_v46, %v1658_v19 }
0x1aa4   :  { %1660 = vmin.xlane.f32.xlu0 %v1659_v24 }
0x1b2d   :  { %v1661_v25 = vpop.xlane.xlu0 %1660 }
0x1b2e   :  { %v1662_v26 = vrot.slane %v1661_v25, 4 }
0x1b30   :  { %v1663_v27 = vmin.f32 %v1661_v25, %v1662_v26 }
0x1b32   :  { %v1664_v38 = vrot.slane %v1663_v27, 2 }
0x1b34   :  { %v1665_v3 = vmin.f32 %v1663_v27, %v1664_v38 }
0x1b36   :  { %v1666_v4 = vrot.slane %v1665_v3, 1 }
0x1b38   :  { %v1667_v1 = vmin.f32 %v1665_v3, %v1666_v4  ;;  %v1351_v3 = vmul.f32 %v3190_v56, %v3205_v29  ;;  %v1416_v4 = vmul.f32 %v3190_v56, %v3223_v60  ;;  %v1612_v29 = vmul.f32 %v3188_v55, %v3274_v52 }
0x1b3a   :  { %2673 = vpush %v1667_v1  ;;  %v1417_v1 = vmul.f32 %v3188_v55, %v3226_v61 }
0x1b6b   :  { %s2674_s10 = spop %2673 }
0x1b6c   :  { %v1669_v39 = vstv %s2674_s10 }
0x1b6d   :  { %vm1670_vm11 = vcmp.eq.f32.partialorder %v2879_v20, %v1669_v39  ;;  %vm1671_vm12 = vcmp.eq.f32.partialorder %v2881_v21, %v1669_v39  ;;  %v1482_v39 = vmul.f32 %v3188_v55, %v3242_v34 }
0x1b6e   :  { %v3287_v2 = vsel %vm1670_vm11, 1.0, %v2721_v28  ;;  %v2467_v40 = vsel %vm1671_vm12, 1.0, %v2721_v28 }
0x1b6f   :  { %vm1701_vm13 = vcmp.gt.f32.partialorder %v3287_v2, 0.5  ;;  %vm1702_vm14 = vcmp.gt.f32.partialorder %v2467_v40, 0.5 }
0x1b70   :  { %v1703_v9 = vsel %vm1701_vm13, -3.0, %v1638_v53  ;;  %v1704_v36 = vsel %vm1702_vm14, -3.0, %v1639_v57 }
0x1b71   :  { %v1705_v41 = vsel %vm184_vm1, %v1703_v9, -inf  ;;  %v1706_v10 = vsel %vm184_vm1, %v1704_v36, -inf }
0x1b72   :  { %v1707_v45 = vmax.f32 %v1705_v41, %v1706_v10 }
0x1b74   :  { %1708 = vmax.xlane.f32.xlu1 %v1707_v45 }
0x1bfd   :  { %v1709_v42 = vpop.xlane.xlu1 %1708 }
0x1bfe   :  { %v1710_v43 = vrot.slane %v1709_v42, 4 }
0x1c00   :  { %v1711_v47 = vmax.f32 %v1709_v42, %v1710_v43 }
0x1c02   :  { %v1712_v44 = vrot.slane %v1711_v47, 2 }
0x1c04   :  { %v1713_v6 = vmax.f32 %v1711_v47, %v1712_v44 }
0x1c06   :  { %v1714_v48 = vrot.slane %v1713_v6, 1 }
0x1c08   :  { %v1715_v58 = vmax.f32 %v1713_v6, %v1714_v48  ;;  %v1352_v48 = vmul.f32 %v3188_v55, %v3208_v31 }
0x1c0a   :  { %2675 = vpush %v1715_v58  ;;  %v1481_v58 = vmul.f32 %v3190_v56, %v3239_v33 }
0x1c3b   :  { %s2676_s27 = spop %2675 }
0x1c3c   :  { %v1717_v59 = vstv %s2676_s27 }
0x1c3d   :  { %vm1718_vm2 = vcmp.eq.f32.partialorder %v1703_v9, %v1717_v59  ;;  %vm1719_vm3 = vcmp.eq.f32.partialorder %v1704_v36, %v1717_v59  ;;  %v1546_v59 = vmul.f32 %v3190_v56, %v3255_v15 }
0x1c3e   :  { %v1720_v53 = vsel %vm1718_vm2, %v2879_v20, 16.0  ;;  %v1721_v57 = vsel %vm1719_vm3, %v2881_v21, 16.0 }
0x1c3f   :  { %v1722_v18 = vsel %vm184_vm1, %v1720_v53, inf  ;;  %v1723_v62 = vsel %vm184_vm1, %v1721_v57, inf  ;;  %v1611_v53 = vmul.f32 %v3190_v56, %v3271_v49  ;;  %v1676_v57 = vmul.f32 %v3190_v56, %v3287_v2 }
0x1c40   :  { %v1724_v63 = vmin.f32 %v1722_v18, %v1723_v62 }
0x1c42   :  { %1725 = vmin.xlane.f32.xlu0 %v1724_v63 }
0x1ccb   :  { %v1726_v0 = vpop.xlane.xlu0 %1725 }
0x1ccc   :  { %v1727_v7 = vrot.slane %v1726_v0, 4 }
0x1cce   :  { %v1728_v8 = vmin.f32 %v1726_v0, %v1727_v7 }
0x1cd0   :  { %v1729_v11 = vrot.slane %v1728_v8, 2 }
0x1cd2   :  { %v1730_v12 = vmin.f32 %v1728_v8, %v1729_v11 }
0x1cd4   :  { %v1731_v13 = vrot.slane %v1730_v12, 1 }
0x1cd6   :  { %v1732_v22 = vmin.f32 %v1730_v12, %v1731_v13  ;;  %v3341_v13 = vld [vmem:[%s3471_s13] sm:$0xff] }
0x1cd8   :  { %2677 = vpush %v1732_v22 }
0x1d09   :  { %s2678_s28 = spop %2677 }
0x1d0a   :  { %v1734_v37 = vstv %s2678_s28 }
0x1d0b   :  { %vm1735_vm4 = vcmp.eq.f32.partialorder %v2879_v20, %v1734_v37  ;;  %vm1736_vm5 = vcmp.eq.f32.partialorder %v2881_v21, %v1734_v37 }
0x1d0c   :  { %v2468_v46 = vsel %vm1735_vm4, 1.0, %v2721_v28  ;;  %v2469_v19 = vsel %vm1736_vm5, 1.0, %v2721_v28 }
0x1d0d   :  { %vm1766_vm7 = vcmp.gt.f32.partialorder %v2468_v46, 0.5  ;;  %vm1767_vm8 = vcmp.gt.f32.partialorder %v2469_v19, 0.5  ;;  %v1742_v60 = vmul.f32 %v3188_v55, %v2469_v19  ;;  %v1741_v18 = vmul.f32 %v3190_v56, %v2468_v46 }
0x1d0e   :  { %v1768_v24 = vsel %vm1766_vm7, -3.0, %v1703_v9  ;;  %v1769_v25 = vsel %vm1767_vm8, -3.0, %v1704_v36  ;;  %v1547_v9 = vmul.f32 %v3188_v55, %v3258_v16  ;;  %v1677_v36 = vmul.f32 %v3188_v55, %v2467_v40 }
0x1d0f   :  { %v1770_v26 = vsel %vm184_vm1, %v1768_v24, -inf  ;;  %v1771_v27 = vsel %vm184_vm1, %v1769_v25, -inf }
0x1d10   :  { %v1772_v38 = vmax.f32 %v1770_v26, %v1771_v27 }
0x1d12   :  { %1773 = vmax.xlane.f32.xlu1 %v1772_v38 }
0x1d23   :  { %1355 = vperm.xlu1 %2688, %v1351_v3  }
0x1d27   :  { %1420 = vperm.xlu1 %2688, %v1416_v4  }
0x1d2b   :  { %1425 = vperm.xlu1 %2688, %v1417_v1  }
0x1d2f   :  { %1490 = vperm.xlu1 %2688, %v1482_v39  }
0x1d33   :  { %1555 = vperm.xlu1 %2688, %v1547_v9  }
0x1d37   :  { %1620 = vperm.xlu1 %2688, %v1612_v29  }
0x1d3b   :  { %1685 = vperm.xlu1 %2688, %v1677_v36  }
0x1d3f   :  { %1750 = vperm.xlu1 %2688, %v1742_v60  }
0x1d9b   :  { %v1774_v61 = vpop.xlane.xlu1 %1773 }
0x1d9c   :  { %v1775_v41 = vrot.slane %v1774_v61, 4 }
0x1d9e   :  { %v1776_v10 = vmax.f32 %v1774_v61, %v1775_v41 }
0x1d9f   :  { %v1356_v22 = vpop.permute.xlu1 %1355 }
0x1da0   :  { %v1777_v45 = vrot.slane %v1776_v10, 2  ;;  %v1363_v39 = vmul.f32 %v1356_v22, %v3178_v50 }
0x1da2   :  { %v1778_v34 = vmax.f32 %v1776_v10, %v1777_v45 }
0x1da3   :  { %v1421_v37 = vpop.permute.xlu1 %1420 }
0x1da4   :  { %v1779_v42 = vrot.slane %v1778_v34, 1  ;;  %v1428_v29 = vmul.f32 %v1421_v37, %v3178_v50 }
0x1da6   :  { %v1780_v43 = vmax.f32 %v1778_v34, %v1779_v42  ;;  %v1365_v34 = vsel %vm95_vm0, %v1363_v39, 0.0  ;;  %v1430_v42 = vsel %vm95_vm0, %v1428_v29, 0.0 }
0x1da7   :  { %v1426_v19 = vpop.permute.xlu1 %1425 }
0x1da8   :  { %2679 = vpush %v1780_v43  ;;  %v1429_v4 = vmul.f32 %v1426_v19, %v3180_v51 }
0x1daa   :  { %v1431_v61 = vsel %vm95_vm0, %v1429_v4, 0.0 }
0x1dd9   :  { %s2680_s7 = spop %2679 }
0x1dda   :  { %v1782_v16 = vstv %s2680_s7 }
0x1ddb   :  { %vm1783_vm9 = vcmp.eq.f32.partialorder %v1768_v24, %v1782_v16  ;;  %vm1784_vm10 = vcmp.eq.f32.partialorder %v1769_v25, %v1782_v16  ;;  %v1491_v25 = vpop.permute.xlu1 %1490 }
0x1ddc   :  { %v1785_v52 = vsel %vm1783_vm9, %v2879_v20, 16.0  ;;  %v1786_v40 = vsel %vm1784_vm10, %v2881_v21, 16.0  ;;  %v1494_v41 = vmul.f32 %v1491_v25, %v3180_v51 }
0x1ddd   :  { %v1787_v47 = vsel %vm184_vm1, %v1785_v52, inf  ;;  %v1788_v44 = vsel %vm184_vm1, %v1786_v40, inf  ;;  %v1432_v40 = vadd.f32 %v1431_v61, %v1430_v42 }
0x1dde   :  { %v1789_v6 = vmin.f32 %v1787_v47, %v1788_v44 }
0x1ddf   :  { %v1556_v27 = vpop.permute.xlu1 %1555 }
0x1de0   :  { %1790 = vmin.xlane.f32.xlu0 %v1789_v6  ;;  %v1559_v43 = vmul.f32 %v1556_v27, %v3180_v51  ;;  %v1496_v6 = vsel %vm95_vm0, %v1494_v41, 0.0 }
0x1de3   :  { %v1621_v3 = vpop.permute.xlu1 %1620 }
0x1de7   :  { %v1686_v60 = vpop.permute.xlu1 %1685 }
0x1df6   :  { %1360 = vperm.xlu0 %2687, %v1352_v48   ;;  %v1624_v48 = vmul.f32 %v1621_v3, %v3180_v51 }
0x1dfa   :  { %1485 = vperm.xlu0 %2687, %v1481_v58  }
0x1dfe   :  { %1550 = vperm.xlu0 %2687, %v1546_v59  }
0x1e02   :  { %1615 = vperm.xlu0 %2687, %v1611_v53   ;;  %v1751_v53 = vpop.permute.xlu1 %1750 }
0x1e06   :  { %1680 = vperm.xlu0 %2687, %v1676_v57  }
0x1e0a   :  { %1745 = vperm.xlu0 %2687, %v1741_v18   ;;  %v1561_v18 = vsel %vm95_vm0, %v1559_v43, 0.0 }
0x1e69   :  { %v1791_v31 = vpop.xlane.xlu0 %1790 }
0x1e6a   :  { %v1792_v62 = vrot.slane %v1791_v31, 4 }
0x1e6c   :  { %v1793_v63 = vmin.f32 %v1791_v31, %v1792_v62  ;;  %v1689_v31 = vmul.f32 %v1686_v60, %v3180_v51 }
0x1e6e   :  { %v1794_v33 = vrot.slane %v1793_v63, 2 }
0x1e70   :  { %v1795_v0 = vmin.f32 %v1793_v63, %v1794_v33 }
0x1e71   :  { %v1361_v46 = vpop.permute.xlu0 %1360 }
0x1e72   :  { %v1796_v7 = vrot.slane %v1795_v0, 1  ;;  %v1364_v1 = vmul.f32 %v1361_v46, %v3180_v51 }
0x1e74   :  { %v1797_v8 = vmin.f32 %v1795_v0, %v1796_v7  ;;  %v1366_v10 = vsel %vm95_vm0, %v1364_v1, 0.0  ;;  %v1433_v7 = vrot.slane %v1432_v40, 4 }
0x1e75   :  { %v1486_v24 = vpop.permute.xlu0 %1485  ;;  %v1367_v47 = vadd.f32 %v1366_v10, %v1365_v34 }
0x1e76   :  { %2681 = vpush %v1797_v8  ;;  %v1493_v36 = vmul.f32 %v1486_v24, %v3178_v50  ;;  %v1626_v8 = vsel %vm95_vm0, %v1624_v48, 0.0  ;;  %v1434_v22 = vadd.f32 %v1433_v7, %v1432_v40 }
0x1e77   :  { %v1368_v33 = vrot.slane %v1367_v47, 4 }
0x1e78   :  { %v1495_v16 = vsel %vm95_vm0, %v1493_v36, 0.0 }
0x1e79   :  { %v1551_v26 = vpop.permute.xlu0 %1550  ;;  %v1497_v57 = vadd.f32 %v1496_v6, %v1495_v16 }
0x1e7a   :  { %v1558_v45 = vmul.f32 %v1551_v26, %v3178_v50 }
0x1e7c   :  { %v1560_v58 = vsel %vm95_vm0, %v1558_v45, 0.0 }
0x1e7d   :  { %v1616_v38 = vpop.permute.xlu0 %1615  ;;  %v1562_v0 = vadd.f32 %v1561_v18, %v1560_v58 }
0x1e7e   :  { %v1623_v52 = vmul.f32 %v1616_v38, %v3178_v50  ;;  %v1435_v38 = vrot.slane %v1434_v22, 2 }
0x1e80   :  { %v1625_v62 = vsel %vm95_vm0, %v1623_v52, 0.0  ;;  %v1436_v36 = vadd.f32 %v1435_v38, %v1434_v22 }
0x1e81   :  { %v1681_v9 = vpop.permute.xlu0 %1680 }
0x1e82   :  { %v1688_v59 = vmul.f32 %v1681_v9, %v3178_v50  ;;  %v1437_v42 = vrot.slane %v1436_v36, 1 }
0x1e84   :  { %v1438_v58 = vadd.f32 %v1437_v42, %v1436_v36 }
0x1e85   :  { %v1746_v44 = vpop.permute.xlu0 %1745 }
0x1e86   :  { %v1753_v63 = vmul.f32 %v1746_v44, %v3178_v50 }
0x1ea7   :  { %s2682_s3 = spop %2681 }
0x1ea8   :  { %v1799_v15 = vstv %s2682_s3 }
0x1ea9   :  { %vm1800_vm11 = vcmp.eq.f32.partialorder %v2879_v20, %v1799_v15  ;;  %vm1801_vm12 = vcmp.eq.f32.partialorder %v2881_v21, %v1799_v15  ;;  %v1223_v20 = vld [vmem:[%s3472_s14 + $0x8] sm:$0xff]  ;;  %v1754_v15 = vmul.f32 %v1751_v53, %v3180_v51 }
0x1eaa   :  { %v2470_v49 = vsel %vm1800_vm11, 1.0, %v2721_v28  ;;  %v2471_v2 = vsel %vm1801_vm12, 1.0, %v2721_v28  ;;  %v1225_v21 = vld [vmem:[%s3473_s15 + $0x8] sm:$0xff]  ;;  %2579 = vmatpush3.msra.mxu0 %v1223_v20  ;;  %v1755_v20 = vsel %vm95_vm0, %v1753_v63, 0.0 }
0x1eab   :  { %v1806_v11 = vmul.f32 %v3190_v56, %v2470_v49  ;;  %v1807_v12 = vmul.f32 %v3188_v55, %v2471_v2  ;;  %2586 = vmatpush3.msra.mxu1 %v1225_v21  ;;  %2580 = vmatprep.subr.mxu0 %v2721_v28  ;;  %v1222_v55 = vld [vmem:[%s3472_s14] sm:$0xff]  ;;  %v1690_v49 = vsel %vm95_vm0, %v1688_v59, 0.0  ;;  %v1498_v2 = vrot.slane %v1497_v57, 4 }
0x1eac   :  { %2587 = vmatprep.subr.mxu1 %v2721_v28  ;;  %v1224_v56 = vld [vmem:[%s3473_s15] sm:$0xff]  ;;  %2581 = vmatpush3.msra.mxu0 %v1222_v55  ;;  %v1369_v21 = vadd.f32 %v1368_v33, %v1367_v47  ;;  %v1563_v55 = vrot.slane %v1562_v0, 4  ;;  %v1756_v37 = vsel %vm95_vm0, %v1754_v15, 0.0  ;;  %v1439_v15 = vmul.f32 %v3089_v23, %v1438_v58 }
0x1ead   :  { %1810 = vperm.xlu0 %2687, %v1806_v11   ;;  %1815 = vperm.xlu1 %2688, %v1807_v12   ;;  %v1627_v11 = vadd.f32 %v1626_v8, %v1625_v62  ;;  %v1691_v12 = vsel %vm95_vm0, %v1689_v31, 0.0  ;;  %v1499_v46 = vadd.f32 %v1498_v2, %v1497_v57  ;;  %v1757_v24 = vadd.f32 %v1756_v37, %v1755_v20 }
0x1eae   :  { %2588 = vmatpush3.msra.mxu1 %v1224_v56  ;;  %2592 = vmatprep.subr.mxu0 %v2721_v28  ;;  %v1692_v56 = vadd.f32 %v1691_v12, %v1690_v49  ;;  %v1370_v25 = vrot.slane %v1369_v21, 2  ;;  %v1564_v26 = vadd.f32 %v1563_v55, %v1562_v0 }
0x1eaf   :  { %2597 = vmatprep.subr.mxu1 %v2721_v28  ;;  %v1628_v19 = vrot.slane %v1627_v11, 4  ;;  %v1500_v3 = vrot.slane %v1499_v46, 2  ;;  %v1758_v1 = vrot.slane %v1757_v24, 4 }
0x1eb0   :  { %v1693_v27 = vrot.slane %v1692_v56, 4  ;;  %v1371_v39 = vadd.f32 %v1370_v25, %v1369_v21  ;;  %v1565_v9 = vrot.slane %v1564_v26, 2 }
0x1eb1   :  { %1832 = vrot.lane.b32.xlu0 %v3341_v13, %s2723_s5  ;;  %v1629_v4 = vadd.f32 %v1628_v19, %v1627_v11  ;;  %v1501_v60 = vadd.f32 %v1500_v3, %v1499_v46  ;;  %v1759_v41 = vadd.f32 %v1758_v1, %v1757_v24 }
0x1eb2   :  { %v1694_v29 = vadd.f32 %v1693_v27, %v1692_v56  ;;  %v1372_v10 = vrot.slane %v1371_v39, 1  ;;  %v1566_v45 = vadd.f32 %v1565_v9, %v1564_v26 }
0x1eb3   :  { %v1630_v61 = vrot.slane %v1629_v4, 2  ;;  %v1502_v43 = vrot.slane %v1501_v60, 1  ;;  %v1760_v52 = vrot.slane %v1759_v41, 2 }
0x1eb4   :  { %v1695_v34 = vrot.slane %v1694_v29, 2  ;;  %v1373_v40 = vadd.f32 %v1372_v10, %v1371_v39  ;;  %v1567_v47 = vrot.slane %v1566_v45, 1 }
0x1eb5   :  { %v1631_v16 = vadd.f32 %v1630_v61, %v1629_v4  ;;  %v1503_v57 = vadd.f32 %v1502_v43, %v1501_v60  ;;  %v1761_v31 = vadd.f32 %v1760_v52, %v1759_v41 }
0x1eb6   :  { %v1696_v44 = vadd.f32 %v1695_v34, %v1694_v29  ;;  %v1374_v33 = vmul.f32 %v3085_v14, %v1373_v40  ;;  %v1568_v0 = vadd.f32 %v1567_v47, %v1566_v45  ;;  %v2480_v47 = vld [vmem:[%s3478_s21] ss:$0 sm:$0xff] }
0x1eb7   :  { %v1632_v18 = vrot.slane %v1631_v16, 1  ;;  %v1504_v49 = vmul.f32 %v3095_v30, %v1503_v57  ;;  %v1762_v11 = vrot.slane %v1761_v31, 1 }
0x1eb8   :  { %v1697_v7 = vrot.slane %v1696_v44, 1  ;;  %v1440_v20 = vadd.f32 %v1439_v15, %v1374_v33  ;;  %v1569_v21 = vmul.f32 %v3103_v32, %v1568_v0  ;;  %v2720_v15 = vld [vmem:[%s3469_s1 + $0x8] sm:$0xff] }
0x1eb9   :  { %v1633_v2 = vadd.f32 %v1632_v18, %v1631_v16  ;;  %v1763_v46 = vadd.f32 %v1762_v11, %v1761_v31 }
0x1eba   :  { %v1698_v55 = vadd.f32 %v1697_v7, %v1696_v44  ;;  %v1505_v22 = vadd.f32 %v1504_v49, %v1440_v20 }
0x1ebb   :  { %v1634_v37 = vmul.f32 %v3108_v35, %v1633_v2  ;;  %v1764_v30 = vmul.f32 %v3117_v5, %v1763_v46  ;;  %v1226_v35 = vld [vmem:[%s3474_s16] sm:$0xff] }
0x1ebc   :  { %v1570_v19 = vadd.f32 %v1569_v21, %v1505_v22  ;;  %v1699_v24 = vmul.f32 %v3113_v17, %v1698_v55  ;;  %v1227_v17 = vld [vmem:[%s3475_s17] sm:$0xff] }
0x1ebd   :  { %v2719_v5 = vld [vmem:[%s3469_s1] sm:$0xff] }
0x1ebe   :  { %v1635_v26 = vadd.f32 %v1634_v37, %v1570_v19 }
0x1ec0   :  { %v1700_v38 = vadd.f32 %v1699_v24, %v1635_v26 }
0x1ec2   :  { %v1765_v3 = vadd.f32 %v1764_v30, %v1700_v38 }
0x1f28   :  { %v1811_v6 = vpop.permute.xlu0 %1810  ;;  %v1816_v48 = vpop.permute.xlu1 %1815 }
0x1f29   :  { %v1818_v59 = vmul.f32 %v1811_v6, %v3178_v50  ;;  %v1819_v53 = vmul.f32 %v1816_v48, %v3180_v51  ;;  %v2478_v48 = vld [vmem:[%s3479_s20] ss:$0 sm:$0xff] }
0x1f2b   :  { %v1820_v62 = vsel %vm95_vm0, %v1818_v59, 0.0  ;;  %v1821_v63 = vsel %vm95_vm0, %v1819_v53, 0.0 }
0x1f2c   :  { %v1822_v8 = vadd.f32 %v1821_v63, %v1820_v62  ;;  %v1833_v4 = vpop.permute.xlu0 %1832 }
0x1f2e   :  { %v1823_v12 = vrot.slane %v1822_v8, 4 }
0x1f30   :  { %v1824_v56 = vadd.f32 %v1823_v12, %v1822_v8 }
0x1f32   :  { %v1825_v14 = vrot.slane %v1824_v56, 2 }
0x1f34   :  { %v1826_v25 = vadd.f32 %v1825_v14, %v1824_v56 }
0x1f36   :  { %v1827_v23 = vrot.slane %v1826_v25, 1 }
0x1f38   :  { %v1828_v27 = vadd.f32 %v1827_v23, %v1826_v25 }
0x1f3a   :  { %v1829_v32 = vmul.f32 %v3123_v54, %v1828_v27  ;;  %v2472_v54 = vld [vmem:[%s3476_s18] ss:$0 sm:$0xff] }
0x1f3c   :  { %v1830_v1 = vadd.f32 %v1829_v32, %v1765_v3 }
0x1f3e   :  { %v1835_v39 = vsel %vm95_vm0, %v1830_v1, %v1833_v4 }
0x1f3f   :  { %2583 = vmatmul.mubr.msk.f32.vlgmr.msra.gmra.mxu0 %vm736_vm15, %v1835_v39  ;;  %2590 = vmatmul.mubr.msk.f32.vlgmr.msra.gmra.mxu1 %vm736_vm15, %v1835_v39 }
0x1f40   :  { %2593 = vmatpush3.msra.mxu0 %v1226_v35  ;;  %2594 = vmatprep.mubr.msk.f32.mxu0 %vm2724_vm6, %v2721_v28 }
0x1f41   :  { %2598 = vmatpush3.msra.mxu1 %v1227_v17  ;;  %2599 = vmatprep.mubr.msk.f32.mxu1 %vm2724_vm6, %v2721_v28 }
0x1f43   :  { %2595 = vmatmul.mubr.msk.f32.vlgmr.msra.gmra.mxu0 %vm95_vm0, %v1830_v1  ;;  %2600 = vmatmul.mubr.msk.f32.vlgmr.msra.gmra.mxu1 %vm95_vm0, %v3341_v13 }
0x1f44   :  { %2604 = vmatprep.mubr.msk.f32.mxu0 %vm95_vm0, %v3178_v50  ;;  %2611 = vmatprep.mubr.msk.f32.mxu1 %vm736_vm15, %v2719_v5  ;;  %v2475_v50 = vld [vmem:[%s3477_s19] ss:$0 sm:$0xff] }
0x1fff   :  { %v1911_v9 = vpop.f32.mrf.mxu0  ;;  %v1993_v28 = vpop.f32.mrf.mxu1 }
0x2000   :  { %v1912_v29 = vadd.f32 %v2472_v54, %v1911_v9  ;;  %v1994_v42 = vadd.f32 %v2475_v50, %v1993_v28 }
0x2001   :  { %v2584_v36 = vpop.f32.mrf.mxu0  ;;  %v2591_v60 = vpop.f32.mrf.mxu1 }
0x2002   :  { %v2474_v61 = vmul.f32 -1.442695, %v1912_v29  ;;  %v2477_v43 = vmul.f32 -1.442695, %v1994_v42 }
0x2003   :  { %v2078_v41 = vpop.f32.mrf.mxu0  ;;  %v2156_v10 = vpop.f32.mrf.mxu1 }
0x2004   :  { %2707 = vpow2.f32 %v2474_v61  ;;  %v2157_v6 = vadd.f32 %v2480_v47, %v2156_v10  ;;  %v2079_v59 = vadd.f32 %v2478_v48, %v2078_v41 }
0x2005   :  { %v2596_v45 = vpop.f32.mrf.mxu0  ;;  %v2601_v34 = vpop.f32.mrf.mxu1  ;;  %2709 = vpow2.f32 %v2477_v43 }
0x2011   :  { %v2708_v16 = vpop.eup %2707 }
0x2012   :  { %v1918_v52 = vadd.f32 1.0, %v2708_v16  ;;  %v2710_v40 = vpop.eup %2709 }
0x2013   :  { %v2000_v44 = vadd.f32 1.0, %v2710_v40 }
0x2014   :  { %2711 = vrcp.f32 %v1918_v52 }
0x2015   :  { %2713 = vrcp.f32 %v2000_v44 }
0x2021   :  { %v2712_v58 = vpop.eup %2711 }
0x2022   :  { %v2160_v53 = vmul.f32 %v2712_v58, %v2157_v6  ;;  %v2714_v18 = vpop.eup %2713 }
0x2023   :  { %v2163_v31 = vsub.f32 1.0, %v2714_v18  ;;  %v2165_v33 = vmul.f32 %v2714_v18, %v3341_v13  ;;  %v2319_v13 = vld [vmem:[%s3480_s22] sm:$0xff] }
0x2024   :  { %v2161_v57 = vadd.f32 %v2160_v53, %v2079_v59 }
0x2026   :  { %2715 = vtanh.f32 %v2161_v57 }
0x2033   :  { %v2716_v62 = vpop.eup %2715 }
0x2034   :  { %v2164_v63 = vmul.f32 %v2716_v62, %v2163_v31 }
0x2036   :  { %v2166_v0 = vadd.f32 %v2165_v33, %v2164_v63 }
0x2038   :  { %2602 = vmatprep.subr.mxu0 %v2166_v0 }
0x2039   :  { %2603 = vmatpush3.msra.mxu0 %v2166_v0 }
0x203a   :  { %2605 = vmatmul.mubr.msk.f32.vlgmr.msra.gmra.mxu0 %vm95_vm0, %v3180_v51  ;;  %2614 = vmatprep.subr.mxu0 %v2319_v13  ;;  %v29_v51 = vstv %s3481_s23 }
0x203b   :  { %2615 = vmatpush3.msra.mxu0 %v2319_v13  ;;  %30 = vst [vmem:[#allocation2] sm:$0x1] %v29_v51 }
0x2042   :  { %v2486_v20 = vld [vmem:[#allocation2] ss:$0 sm:$0xff] }
0x20fa   :  { %v2606_v7 = vpop.f32.mrf.mxu0 }
0x20fb   :  { %2607 = vmatprep.subr.mxu1 %v2606_v7 }
0x20fc   :  { %v2233_v8 = vpop.f32.mrf.mxu0  ;;  %2608 = vmatpush3.msra.mxu1 %v2606_v7 }
0x20fd   :  { %2609 = vmatprep.subr.mxu1 %v2233_v8 }
0x20fe   :  { %2610 = vmatpush3.msra.mxu1 %v2233_v8 }
0x20ff   :  { %2612 = vmatmul.mubr.msk.f32.vlgmr.msra.gmra.mxu1 %vm736_vm15, %v2720_v15 }
0x21bf   :  { %v2613_v49 = vpop.f32.mrf.mxu1 }
0x21c0   :  { %v2318_v12 = vmax.f32 %v2613_v49, 0.0 }
0x21c1   :  { %v2308_v2 = vpop.f32.mrf.mxu1 }
0x21c2   :  { %v2317_v11 = vmax.f32 %v2308_v2, 0.0 }
0x21c4   :  { %2616 = vmatprep.mubr.msk.f32.mxu0 %vm95_vm0, %v2317_v11 }
0x21c5   :  { %2617 = vmatmul.mubr.msk.f32.vlgmr.msra.gmra.mxu0 %vm95_vm0, %v2318_v12 }
0x2285   :  { %v2618_v21 = vpop.f32.mrf.mxu0 }
0x2286   :  { %v2405_v55 = vadd.f32 %v2618_v21, %v2486_v20 }
0x2287   :  { %v2399_v56 = vpop.f32.mrf.mxu0 }
0x2288   :  { %2409 = vst.msk [vmem:[%s3482_s24 + $0x8] sm:$0xff] %vm184_vm1, %v2405_v55  ;;  %v2400_v22 = vadd.f32 %v2486_v20, %v2399_v56 }
0x228a   :  { %2408 = vst.msk [vmem:[%s3482_s24] sm:$0xff] %vm184_vm1, %v2400_v22 }

</bundles_post_ra>
